<compile_context>
chip_gen: v6e
topology: v6e:2x2x1
jax: 0.10.0
libtpu: 0.0.40
codegen_flags: <defaults>
</compile_context>

<pallas_src>
import functools

import jax
import jax.numpy as jnp
from jax import lax
from jax.experimental import pallas as pl
from jax.experimental.pallas import tpu as pltpu


# ----------------------------------------------------------------------------
# Kernel: WB windows per grid step.
# ----------------------------------------------------------------------------
def block_kernel(
    x_ref,                   # (WB, N, C) f32
    g1_ref, b1_ref,          # (1, C) f32  LayerNorm 1 gamma/beta
    wqkv_ref,                # (C, 3C) bf16  head-major columns, q-scale folded
    qkvb_ref,                # (1, 3C) f32   head-major [scale*q_b | 0 | v_b]
    rpb_ref,                 # (H, N, N) f32 relative position bias (pre-gathered)
    wp_ref,                  # (C, C) bf16   out-projection (w_proj.T)
    bp_ref,                  # (1, C) f32
    g2_ref, b2_ref,          # (1, C) f32  LayerNorm 2 gamma/beta
    w1_ref, bm1_ref,         # (C, Hid) bf16, (1, Hid) f32   MLP fc1
    w2_ref, bm2_ref,         # (Hid, C) bf16, (1, C) f32     MLP fc2
    o_ref,                   # (WB, N, C) f32
    ctx_ref,                 # (WB*N, C) bf16 scratch: head-concat context
    *, num_heads, head_dim, eps,
):
    WB, N, C = x_ref.shape
    M = WB * N
    x = x_ref[...].reshape(M, C)                           # (M, C) f32

    def layernorm(v, g, b):
        # Fused stats: mean and mean-of-squares in one pass (independent
        # reductions), var = E[v^2] - mu^2 clamped at 0 for safety.
        mu = jnp.mean(v, axis=-1, keepdims=True)
        msq = jnp.mean(v * v, axis=-1, keepdims=True)
        var = jnp.maximum(msq - mu * mu, 0.0)
        return (v - mu) * lax.rsqrt(var + eps) * g + b

    # ---- attention branch ---------------------------------------------------
    xn = layernorm(x, g1_ref[...], b1_ref[...])            # (M, C) f32
    qkv = jnp.dot(xn.astype(jnp.bfloat16), wqkv_ref[...],
                  preferred_element_type=jnp.float32) + qkvb_ref[...]   # (M, 3C)

    for h in range(num_heads):        # static unroll; each step batched over WB
        base = 3 * head_dim * h
        blk = qkv[:, base: base + 3 * head_dim]            # contiguous (M, 3hd)
        q_h = blk[:, 0 * head_dim:1 * head_dim].reshape(WB, N, head_dim)
        k_h = blk[:, 1 * head_dim:2 * head_dim].reshape(WB, N, head_dim)
        v_h = blk[:, 2 * head_dim:3 * head_dim].reshape(WB, N, head_dim)
        q_h = q_h.astype(jnp.bfloat16)
        k_h = k_h.astype(jnp.bfloat16)
        v_h = v_h.astype(jnp.bfloat16)

        logits = jnp.einsum("bqd,bkd->bqk", q_h, k_h,
                            preferred_element_type=jnp.float32)         # (WB,N,N)
        logits = logits + rpb_ref[h]                                    # bcast
        logits = logits - jnp.max(logits, axis=-1, keepdims=True)
        p = jnp.exp(logits)
        # approx reciprocal (EUP); acceptable ~1e-3 rel error, see tolerance.
        p = p * pl.reciprocal(jnp.sum(p, axis=-1, keepdims=True), approx=True)

        ctx = jnp.einsum("bqk,bkd->bqd", p.astype(jnp.bfloat16), v_h,
                         preferred_element_type=jnp.float32)            # (WB,N,hd)
        # "concat over heads" = lane-offset store into the scratch.
        ctx_ref[:, h * head_dim:(h + 1) * head_dim] = (
            ctx.reshape(M, head_dim).astype(jnp.bfloat16))

    # single full-depth (M,C)@(C,C) projection
    attn_out = jnp.dot(ctx_ref[...], wp_ref[...],
                       preferred_element_type=jnp.float32) + bp_ref[...]
    x1 = x + attn_out                                       # residual 1

    # ---- MLP branch ----------------------------------------------------------
    xn2 = layernorm(x1, g2_ref[...], b2_ref[...])
    h1 = jnp.dot(xn2.astype(jnp.bfloat16), w1_ref[...],
                 preferred_element_type=jnp.float32) + bm1_ref[...]     # (M, Hid)
    # exact GELU (PyTorch nn.GELU default): 0.5*x*(1+erf(x/sqrt(2)))
    h1 = 0.5 * h1 * (1.0 + lax.erf(h1 * jnp.float32(0.7071067811865476)))
    h2 = jnp.dot(h1.astype(jnp.bfloat16), w2_ref[...],
                 preferred_element_type=jnp.float32) + bm2_ref[...]     # (M, C)

    o_ref[...] = (x1 + h2).reshape(WB, N, C)                # residual 2


# ----------------------------------------------------------------------------
# Wrapper helpers
# ----------------------------------------------------------------------------
def _physical_vmem_bytes():
    """Per-TensorCore physical VMEM; conservative fallback if unknown."""
    try:
        info = pltpu.get_tpu_info()
        for attr in ("vmem_capacity_bytes", "vmem_size_bytes", "vmem_bytes"):
            v = getattr(info, attr, None)
            if v:
                return int(v)
    except Exception:
        pass
    try:
        kind = jax.devices()[0].device_kind.lower()
        if "v7" in kind:
            return 64 << 20
        if ("v5" in kind) or ("v6" in kind):
            return 128 << 20
    except Exception:
        pass
    return 64 << 20          # conservative (v7x-like) default


def _estimate_vmem_bytes(kparams, WB, N, C, hid, num_heads):
    """Working-set estimate, including double-buffered weight inputs."""
    w_bytes = sum(int(a.size) * a.dtype.itemsize for a in kparams.values())
    rows = WB * N
    io_bytes = 2 * 2 * rows * C * 4                 # double-buffered x / out f32
    ctx_bytes = rows * C * 2                        # bf16 scratch
    act_bytes = rows * (3 * C + hid + 6 * C) * 4    # qkv, mlp hidden, f32 temps
    attn_bytes = 4 * WB * N * N * 4                 # live per-head logits/probs
    return 2 * w_bytes + io_bytes + ctx_bytes + act_bytes + attn_bytes


def _pick_window_block(B, N, C, hid, num_heads, kparams, vmem_cap, target_rows):
    """Largest-enough divisor of B that fits the VMEM budget, preferring an
    even grid length >= 4 (v7x megacore) and >= target_rows token rows."""
    divisors = [d for d in range(1, B + 1) if B % d == 0]
    budget = int(0.85 * vmem_cap)
    fits = [d for d in divisors
            if _estimate_vmem_bytes(kparams, d, N, C, hid, num_heads) <= budget]
    cands = fits or [1]
    for pred in (lambda d: (B // d) >= 4 and (B // d) % 2 == 0,
                 lambda d: (B // d) >= 2 and (B // d) % 2 == 0,
                 lambda d: (B // d) >= 2):
        sub = [d for d in cands if pred(d)]
        if sub:
            cands = sub
            break
    for d in cands:                       # ascending: smallest d reaching target
        if d * N >= target_rows:
            return d
    return cands[-1]


def _cost_estimate(B, N, C, hid, num_heads, kparams):
    rows = B * N
    head_dim = C // num_heads
    matmul_flops = 2 * rows * C * (3 * C + C + 2 * hid)
    attn_flops = 2 * 2 * B * num_heads * N * N * head_dim
    transcendentals = rows * hid + B * num_heads * N * N + 4 * rows
    w_bytes = sum(int(a.size) * a.dtype.itemsize for a in kparams.values())
    return pl.CostEstimate(flops=int(matmul_flops + attn_flops),
                           transcendentals=int(transcendentals),
                           bytes_accessed=int(2 * rows * C * 4 + w_bytes))


def block_forward(x, kparams, *, num_heads, window_size, eps=1e-5,
                  window_block=None):
    B, N, C = x.shape
    assert N == window_size * window_size
    head_dim = C // num_heads
    hid = kparams["w1"].shape[1]

    # Generation-aware VMEM budget with headroom for compiler scratch/sems:
    #   128 MiB (v5e/v6e) -> ~112 MiB cap;  64 MiB (v7x) -> ~52 MiB cap.
    phys = _physical_vmem_bytes()
    cap = max(min(phys * 7 // 8, phys - (12 << 20)), 32 << 20)
    target_rows = 512 if phys >= (96 << 20) else 256

    WB = window_block or _pick_window_block(
        B, N, C, hid, num_heads, kparams, cap, target_rows)
    assert B % WB == 0
    grid = (B // WB,)

    est = _estimate_vmem_bytes(kparams, WB, N, C, hid, num_heads)
    vmem_limit = int(min(cap, max(est + (8 << 20), 32 << 20)))

    def full_spec(arr):
        nd = arr.ndim
        return pl.BlockSpec(arr.shape, lambda b, _nd=nd: (0,) * _nd)

    kernel = functools.partial(
        block_kernel, num_heads=num_heads, head_dim=head_dim, eps=eps)

    ordered = [
        kparams["g1"], kparams["b1"],
        kparams["wqkv"], kparams["qkvb"],
        kparams["rpb"],
        kparams["wp"], kparams["bp"],
        kparams["g2"], kparams["b2"],
        kparams["w1"], kparams["bm1"],
        kparams["w2"], kparams["bm2"],
    ]

    return pl.pallas_call(
        kernel,
        out_shape=jax.ShapeDtypeStruct((B, N, C), jnp.float32),
        grid_spec=pltpu.PrefetchScalarGridSpec(
            num_scalar_prefetch=0,
            grid=grid,
            in_specs=[pl.BlockSpec((WB, N, C), lambda b: (b, 0, 0))]
                    + [full_spec(a) for a in ordered],
            out_specs=pl.BlockSpec((WB, N, C), lambda b: (b, 0, 0)),
            scratch_shapes=[pltpu.VMEM((WB * N, C), jnp.bfloat16)],
        ),
        compiler_params=pltpu.CompilerParams(
            dimension_semantics=("parallel",),
            vmem_limit_bytes=vmem_limit),
        cost_estimate=_cost_estimate(B, N, C, hid, num_heads, kparams),
    )(x, *ordered)


# ----------------------------------------------------------------------------
# Deterministic parameter construction (matches module __init__ shapes).
# Returns (kernel-layout params, raw torch-layout params for the reference).
# ----------------------------------------------------------------------------
def make_params(key, dim, num_heads, mlp_ratio, window_size):
    hid = int(dim * mlp_ratio)
    N = window_size * window_size
    head_dim = dim // num_heads
    scale = head_dim ** (-0.5)
    keys = jax.random.split(key, 10)

    def rnd(k, shape, s=0.05):
        return jax.random.normal(k, shape, jnp.float32) * s

    # attention params (torch layout: (out, in))
    w_qkv = rnd(keys[0], (3 * dim, dim))
    q_bias = rnd(keys[1], (dim,))
    v_bias = rnd(keys[2], (dim,))
    rpb_table = rnd(keys[3], ((2 * window_size - 1) ** 2, num_heads))
    w_proj = rnd(keys[4], (dim, dim))
    b_proj = rnd(keys[5], (dim,))
    # mlp params
    w1 = rnd(keys[6], (hid, dim))
    bm1 = rnd(keys[7], (hid,))
    w2 = rnd(keys[8], (dim, hid))
    bm2 = rnd(keys[9], (dim,))
    # layernorm params (PyTorch default init)
    g1 = jnp.ones((dim,), jnp.float32); b1 = jnp.zeros((dim,), jnp.float32)
    g2 = jnp.ones((dim,), jnp.float32); b2 = jnp.zeros((dim,), jnp.float32)

    # relative position index (identical to the PyTorch buffer) — param-only glue
    coords_h = jnp.arange(window_size)
    coords_w = jnp.arange(window_size)
    coords = jnp.stack(jnp.meshgrid(coords_h, coords_w, indexing="ij"))
    coords_flat = coords.reshape(2, -1)
    rel = coords_flat[:, :, None] - coords_flat[:, None, :]
    rel = jnp.transpose(rel, (1, 2, 0))
    rel = rel.at[:, :, 0].add(window_size - 1)
    rel = rel.at[:, :, 1].add(window_size - 1)
    rel = rel.at[:, :, 0].multiply(2 * window_size - 1)
    rel_index = rel.sum(-1)                                     # (N, N)

    rpb = rpb_table[rel_index.reshape(-1)].reshape(N, N, num_heads)
    rpb = jnp.transpose(rpb, (2, 0, 1)).astype(jnp.float32)     # (H, N, N)

    raw = dict(w_qkv=w_qkv, q_bias=q_bias, v_bias=v_bias, rpb=rpb,
               w_proj=w_proj, b_proj=b_proj, w1=w1, bm1=bm1, w2=w2, bm2=bm2,
               g1=g1, b1=b1, g2=g2, b2=b2)

    # --- kernel-layout params ------------------------------------------------
    # qkv: transpose to (C, 3C), fold attention scale into q columns, then
    # reorder columns HEAD-MAJOR: [q_h | k_h | v_h] contiguous per head.
    wqkv_t = w_qkv.T                                            # (C, 3C)
    wqkv_t = wqkv_t.at[:, :dim].multiply(scale)                 # fold q scale
    wqkv_hm = wqkv_t.reshape(dim, 3, num_heads, head_dim)
    wqkv_hm = jnp.transpose(wqkv_hm, (0, 2, 1, 3)).reshape(dim, 3 * dim)

    qkv_bias = jnp.concatenate(
        [q_bias * scale, jnp.zeros_like(v_bias), v_bias], axis=0)   # (3C,)
    qkvb_hm = jnp.transpose(qkv_bias.reshape(3, num_heads, head_dim),
                            (1, 0, 2)).reshape(3 * dim)

    kparams = dict(
        g1=g1.reshape(1, -1), b1=b1.reshape(1, -1),
        wqkv=wqkv_hm.astype(jnp.bfloat16),
        qkvb=qkvb_hm.reshape(1, -1),
        rpb=rpb,
        wp=w_proj.T.astype(jnp.bfloat16),                       # (C, C)
        bp=b_proj.reshape(1, -1),
        g2=g2.reshape(1, -1), b2=b2.reshape(1, -1),
        w1=w1.T.astype(jnp.bfloat16), bm1=bm1.reshape(1, -1),
        w2=w2.T.astype(jnp.bfloat16), bm2=bm2.reshape(1, -1),
    )
    return kparams, raw


# ----------------------------------------------------------------------------
# Pure-JAX f32 reference (mirrors the PyTorch forward exactly).
# ----------------------------------------------------------------------------
def block_reference(x, raw, *, num_heads, eps=1e-5):
    B, N, C = x.shape
    hd = C // num_heads
    scale = hd ** (-0.5)

    def ln(v, g, b):
        mu = v.mean(-1, keepdims=True)
        var = ((v - mu) ** 2).mean(-1, keepdims=True)
        return (v - mu) / jnp.sqrt(var + eps) * g + b

    xn = ln(x, raw["g1"], raw["b1"])
    qkv_bias = jnp.concatenate(
        [raw["q_bias"], jnp.zeros_like(raw["v_bias"]), raw["v_bias"]], axis=0)
    qkv = xn @ raw["w_qkv"].T + qkv_bias
    qkv = qkv.reshape(B, N, 3, num_heads, hd).transpose(2, 0, 3, 1, 4)
    q, k, v = qkv[0] * scale, qkv[1], qkv[2]
    attn = q @ jnp.swapaxes(k, -1, -2) + raw["rpb"][None]
    attn = jax.nn.softmax(attn, axis=-1)
    a = (attn @ v).transpose(0, 2, 1, 3).reshape(B, N, C)
    a = a @ raw["w_proj"].T + raw["b_proj"]
    x1 = x + a
    xn2 = ln(x1, raw["g2"], raw["b2"])
    h = xn2 @ raw["w1"].T + raw["bm1"]
    h = 0.5 * h * (1.0 + lax.erf(h / jnp.sqrt(2.0)))
    h = h @ raw["w2"].T + raw["bm2"]
    return x1 + h


if __name__ == "__main__":
    # Small shapes consistent with the module: N must equal window_size**2.
    B = 8
    window_size = 4
    N = window_size * window_size      # 16 tokens per window
    dim = 32
    num_heads = 4
    mlp_ratio = 4.0

    key = jax.random.PRNGKey(0)
    kx, kp = jax.random.split(key)
    x = jax.random.normal(kx, (B, N, dim), jnp.float32)
    kparams, raw = make_params(kp, dim, num_heads, mlp_ratio, window_size)

    out = block_forward(x, kparams, num_heads=num_heads, window_size=window_size)
    out = jax.block_until_ready(out)

    ref = block_reference(x, raw, num_heads=num_heads)
    assert out.shape == (B, N, dim)
    max_err = float(jnp.max(jnp.abs(out - ref)))
    # bf16 MXU operands + approx softmax reciprocal vs. f32 reference.
    assert jnp.allclose(out, ref, atol=2e-2, rtol=2e-2), max_err

    print("KERNEL_OK")
</pallas_src>

<mosaic_0001>
module attributes {stable_mosaic.version = 11 : i64} {
  func.func @block_kernel(%arg0: i32, %arg1: memref<2x16x32xf32, #tpu.memory_space<vmem>>, %arg2: memref<1x32xf32, #tpu.memory_space<vmem>>, %arg3: memref<1x32xf32, #tpu.memory_space<vmem>>, %arg4: memref<32x96xbf16, #tpu.memory_space<vmem>>, %arg5: memref<1x96xf32, #tpu.memory_space<vmem>>, %arg6: memref<4x16x16xf32, #tpu.memory_space<vmem>>, %arg7: memref<32x32xbf16, #tpu.memory_space<vmem>>, %arg8: memref<1x32xf32, #tpu.memory_space<vmem>>, %arg9: memref<1x32xf32, #tpu.memory_space<vmem>>, %arg10: memref<1x32xf32, #tpu.memory_space<vmem>>, %arg11: memref<32x128xbf16, #tpu.memory_space<vmem>>, %arg12: memref<1x128xf32, #tpu.memory_space<vmem>>, %arg13: memref<128x32xbf16, #tpu.memory_space<vmem>>, %arg14: memref<1x32xf32, #tpu.memory_space<vmem>>, %arg15: memref<2x16x32xf32, #tpu.memory_space<vmem>>, %arg16: memref<32x32xbf16, #tpu.memory_space<vmem>>) attributes {dimension_semantics = [#tpu.dimension_semantics<parallel>], iteration_bounds = array<i64: 4>, scalar_prefetch = 0 : i64, scratch_operands = 1 : i64, tpu.core_type = #tpu.core_type<tc>, window_params = [{transform_indices = @transform_0, window_bounds = array<i64: 2, 16, 32>}, {pipeline_mode = #tpu.pipeline_mode<synchronous>, transform_indices = @transform_1, window_bounds = array<i64: 1, 32>}, {pipeline_mode = #tpu.pipeline_mode<synchronous>, transform_indices = @transform_2, window_bounds = array<i64: 1, 32>}, {pipeline_mode = #tpu.pipeline_mode<synchronous>, transform_indices = @transform_3, window_bounds = array<i64: 32, 96>}, {pipeline_mode = #tpu.pipeline_mode<synchronous>, transform_indices = @transform_4, window_bounds = array<i64: 1, 96>}, {pipeline_mode = #tpu.pipeline_mode<synchronous>, transform_indices = @transform_5, window_bounds = array<i64: 4, 16, 16>}, {pipeline_mode = #tpu.pipeline_mode<synchronous>, transform_indices = @transform_6, window_bounds = array<i64: 32, 32>}, {pipeline_mode = #tpu.pipeline_mode<synchronous>, transform_indices = @transform_7, window_bounds = array<i64: 1, 32>}, {pipeline_mode = #tpu.pipeline_mode<synchronous>, transform_indices = @transform_8, window_bounds = array<i64: 1, 32>}, {pipeline_mode = #tpu.pipeline_mode<synchronous>, transform_indices = @transform_9, window_bounds = array<i64: 1, 32>}, {pipeline_mode = #tpu.pipeline_mode<synchronous>, transform_indices = @transform_10, window_bounds = array<i64: 32, 128>}, {pipeline_mode = #tpu.pipeline_mode<synchronous>, transform_indices = @transform_11, window_bounds = array<i64: 1, 128>}, {pipeline_mode = #tpu.pipeline_mode<synchronous>, transform_indices = @transform_12, window_bounds = array<i64: 128, 32>}, {pipeline_mode = #tpu.pipeline_mode<synchronous>, transform_indices = @transform_13, window_bounds = array<i64: 1, 32>}, {transform_indices = @transform_14, window_bounds = array<i64: 2, 16, 32>}]} {
    %c0 = arith.constant 0 : index
    %c0_0 = arith.constant 0 : index
    %c0_1 = arith.constant 0 : index
    %0 = vector.load %arg1[%c0, %c0_0, %c0_1] : memref<2x16x32xf32, #tpu.memory_space<vmem>>, vector<2x16x32xf32>
    %1 = vector.shape_cast %0 : vector<2x16x32xf32> to vector<32x32xf32>
    %c0_2 = arith.constant 0 : index
    %c0_3 = arith.constant 0 : index
    %2 = vector.load %arg2[%c0_2, %c0_3] : memref<1x32xf32, #tpu.memory_space<vmem>>, vector<1x32xf32>
    %c0_4 = arith.constant 0 : index
    %c0_5 = arith.constant 0 : index
    %3 = vector.load %arg3[%c0_4, %c0_5] : memref<1x32xf32, #tpu.memory_space<vmem>>, vector<1x32xf32>
    %cst = arith.constant dense<0.000000e+00> : vector<32xf32>
    %4 = vector.multi_reduction <add>, %1, %cst [1] : vector<32x32xf32> to vector<32xf32>
    %5 = vector.shape_cast %4 : vector<32xf32> to vector<32x1xf32>
    %cst_6 = arith.constant 3.200000e+01 : f32
    %6 = vector.broadcast %cst_6 : f32 to vector<32x1xf32>
    %7 = arith.divf %5, %6 : vector<32x1xf32>
    %8 = arith.mulf %1, %1 : vector<32x32xf32>
    %cst_7 = arith.constant dense<0.000000e+00> : vector<32xf32>
    %9 = vector.multi_reduction <add>, %8, %cst_7 [1] : vector<32x32xf32> to vector<32xf32>
    %10 = vector.shape_cast %9 : vector<32xf32> to vector<32x1xf32>
    %cst_8 = arith.constant 3.200000e+01 : f32
    %11 = vector.broadcast %cst_8 : f32 to vector<32x1xf32>
    %12 = arith.divf %10, %11 : vector<32x1xf32>
    %13 = arith.mulf %7, %7 : vector<32x1xf32>
    %14 = arith.subf %12, %13 : vector<32x1xf32>
    %cst_9 = arith.constant 0.000000e+00 : f32
    %15 = vector.broadcast %cst_9 : f32 to vector<32x1xf32>
    %16 = arith.maximumf %14, %15 : vector<32x1xf32>
    %17 = vector.broadcast %7 : vector<32x1xf32> to vector<32x32xf32>
    %18 = arith.subf %1, %17 : vector<32x32xf32>
    %cst_10 = arith.constant 9.99999974E-6 : f32
    %19 = vector.broadcast %cst_10 : f32 to vector<32x1xf32>
    %20 = arith.addf %16, %19 : vector<32x1xf32>
    %21 = math.rsqrt %20 : vector<32x1xf32>
    %22 = vector.broadcast %21 : vector<32x1xf32> to vector<32x32xf32>
    %23 = arith.mulf %18, %22 : vector<32x32xf32>
    %24 = vector.broadcast %2 : vector<1x32xf32> to vector<32x32xf32>
    %25 = arith.mulf %23, %24 : vector<32x32xf32>
    %26 = vector.broadcast %3 : vector<1x32xf32> to vector<32x32xf32>
    %27 = arith.addf %25, %26 : vector<32x32xf32>
    %28 = arith.truncf %27 : vector<32x32xf32> to vector<32x32xbf16>
    %c0_11 = arith.constant 0 : index
    %c0_12 = arith.constant 0 : index
    %29 = vector.load %arg4[%c0_11, %c0_12] : memref<32x96xbf16, #tpu.memory_space<vmem>>, vector<32x96xbf16>
    %cst_13 = arith.constant dense<0.000000e+00> : vector<32x96xf32>
    %30 = tpu.matmul %28, %29, %cst_13 {dimension_numbers = #tpu.dot_dimension_numbers<[1], [0], [0], [1], [0, 0, 1, 1], [], []>} : vector<32x32xbf16>, vector<32x96xbf16>, vector<32x96xf32> -> vector<32x96xf32>
    %c0_14 = arith.constant 0 : index
    %c0_15 = arith.constant 0 : index
    %31 = vector.load %arg5[%c0_14, %c0_15] : memref<1x96xf32, #tpu.memory_space<vmem>>, vector<1x96xf32>
    %32 = vector.broadcast %31 : vector<1x96xf32> to vector<32x96xf32>
    %33 = arith.addf %30, %32 : vector<32x96xf32>
    %34 = vector.extract_strided_slice %33 {offsets = [0, 0], sizes = [32, 24], strides = [1, 1]} : vector<32x96xf32> to vector<32x24xf32>
    %35 = vector.extract_strided_slice %34 {offsets = [0, 0], sizes = [32, 8], strides = [1, 1]} : vector<32x24xf32> to vector<32x8xf32>
    %36 = vector.shape_cast %35 : vector<32x8xf32> to vector<2x16x8xf32>
    %37 = vector.extract_strided_slice %34 {offsets = [0, 8], sizes = [32, 8], strides = [1, 1]} : vector<32x24xf32> to vector<32x8xf32>
    %38 = vector.shape_cast %37 : vector<32x8xf32> to vector<2x16x8xf32>
    %39 = vector.extract_strided_slice %34 {offsets = [0, 16], sizes = [32, 8], strides = [1, 1]} : vector<32x24xf32> to vector<32x8xf32>
    %40 = vector.shape_cast %39 : vector<32x8xf32> to vector<2x16x8xf32>
    %41 = arith.truncf %36 : vector<2x16x8xf32> to vector<2x16x8xbf16>
    %42 = arith.truncf %38 : vector<2x16x8xf32> to vector<2x16x8xbf16>
    %43 = arith.truncf %40 : vector<2x16x8xf32> to vector<2x16x8xbf16>
    "tpu.trace_start"() <{level = 10 : i32, message = "bqd,bkd->bqk"}> : () -> ()
    %cst_16 = arith.constant dense<0.000000e+00> : vector<2x16x16xf32>
    %44 = tpu.matmul %41, %42, %cst_16 {dimension_numbers = #tpu.dot_dimension_numbers<[2], [2], [1], [1], [0, 0, 0, 1, 1, 1], [0], [0]>} : vector<2x16x8xbf16>, vector<2x16x8xbf16>, vector<2x16x16xf32> -> vector<2x16x16xf32>
    "tpu.trace_stop"() : () -> ()
    %c0_17 = arith.constant 0 : index
    %c0_18 = arith.constant 0 : index
    %c0_19 = arith.constant 0 : index
    %45 = vector.load %arg6[%c0_17, %c0_18, %c0_19] : memref<4x16x16xf32, #tpu.memory_space<vmem>>, vector<1x16x16xf32>
    %46 = vector.shape_cast %45 : vector<1x16x16xf32> to vector<16x16xf32>
    %47 = vector.shape_cast %46 : vector<16x16xf32> to vector<1x16x16xf32>
    %48 = vector.broadcast %47 : vector<1x16x16xf32> to vector<2x16x16xf32>
    %49 = arith.addf %44, %48 : vector<2x16x16xf32>
    %cst_20 = arith.constant dense<0xFF800000> : vector<2x16xf32>
    %50 = vector.multi_reduction <maximumf>, %49, %cst_20 [2] : vector<2x16x16xf32> to vector<2x16xf32>
    %51 = vector.shape_cast %50 : vector<2x16xf32> to vector<2x16x1xf32>
    %52 = vector.broadcast %51 : vector<2x16x1xf32> to vector<2x16x16xf32>
    %53 = arith.subf %49, %52 : vector<2x16x16xf32>
    %54 = math.exp %53 : vector<2x16x16xf32>
    %cst_21 = arith.constant dense<0.000000e+00> : vector<2x16xf32>
    %55 = vector.multi_reduction <add>, %54, %cst_21 [2] : vector<2x16x16xf32> to vector<2x16xf32>
    %56 = vector.shape_cast %55 : vector<2x16xf32> to vector<2x16x1xf32>
    %57 = tpu.reciprocal %56 {approx = true} : vector<2x16x1xf32> -> vector<2x16x1xf32>
    %58 = vector.broadcast %57 : vector<2x16x1xf32> to vector<2x16x16xf32>
    %59 = arith.mulf %54, %58 : vector<2x16x16xf32>
    %60 = arith.truncf %59 : vector<2x16x16xf32> to vector<2x16x16xbf16>
    "tpu.trace_start"() <{level = 10 : i32, message = "bqk,bkd->bqd"}> : () -> ()
    %cst_22 = arith.constant dense<0.000000e+00> : vector<2x16x8xf32>
    %61 = tpu.matmul %60, %43, %cst_22 {dimension_numbers = #tpu.dot_dimension_numbers<[2], [1], [1], [2], [0, 0, 0, 1, 1, 2], [0], [0]>} : vector<2x16x16xbf16>, vector<2x16x8xbf16>, vector<2x16x8xf32> -> vector<2x16x8xf32>
    "tpu.trace_stop"() : () -> ()
    %62 = vector.shape_cast %61 : vector<2x16x8xf32> to vector<32x8xf32>
    %63 = arith.truncf %62 : vector<32x8xf32> to vector<32x8xbf16>
    %c0_23 = arith.constant 0 : index
    %c0_24 = arith.constant 0 : index
    %64 = vector.load %arg16[%c0_23, %c0_24] : memref<32x32xbf16, #tpu.memory_space<vmem>>, vector<32x8xbf16>
    tpu.vector_store %arg16[%c0_23, %c0_24], %63 {strides = array<i32>} : memref<32x32xbf16, #tpu.memory_space<vmem>>, vector<32x8xbf16>,
    %65 = vector.extract_strided_slice %33 {offsets = [0, 24], sizes = [32, 24], strides = [1, 1]} : vector<32x96xf32> to vector<32x24xf32>
    %66 = vector.extract_strided_slice %65 {offsets = [0, 0], sizes = [32, 8], strides = [1, 1]} : vector<32x24xf32> to vector<32x8xf32>
    %67 = vector.shape_cast %66 : vector<32x8xf32> to vector<2x16x8xf32>
    %68 = vector.extract_strided_slice %65 {offsets = [0, 8], sizes = [32, 8], strides = [1, 1]} : vector<32x24xf32> to vector<32x8xf32>
    %69 = vector.shape_cast %68 : vector<32x8xf32> to vector<2x16x8xf32>
    %70 = vector.extract_strided_slice %65 {offsets = [0, 16], sizes = [32, 8], strides = [1, 1]} : vector<32x24xf32> to vector<32x8xf32>
    %71 = vector.shape_cast %70 : vector<32x8xf32> to vector<2x16x8xf32>
    %72 = arith.truncf %67 : vector<2x16x8xf32> to vector<2x16x8xbf16>
    %73 = arith.truncf %69 : vector<2x16x8xf32> to vector<2x16x8xbf16>
    %74 = arith.truncf %71 : vector<2x16x8xf32> to vector<2x16x8xbf16>
    "tpu.trace_start"() <{level = 10 : i32, message = "bqd,bkd->bqk"}> : () -> ()
    %cst_25 = arith.constant dense<0.000000e+00> : vector<2x16x16xf32>
    %75 = tpu.matmul %72, %73, %cst_25 {dimension_numbers = #tpu.dot_dimension_numbers<[2], [2], [1], [1], [0, 0, 0, 1, 1, 1], [0], [0]>} : vector<2x16x8xbf16>, vector<2x16x8xbf16>, vector<2x16x16xf32> -> vector<2x16x16xf32>
    "tpu.trace_stop"() : () -> ()
    %c1 = arith.constant 1 : index
    %c0_26 = arith.constant 0 : index
    %c0_27 = arith.constant 0 : index
    %76 = vector.load %arg6[%c1, %c0_26, %c0_27] : memref<4x16x16xf32, #tpu.memory_space<vmem>>, vector<1x16x16xf32>
    %77 = vector.shape_cast %76 : vector<1x16x16xf32> to vector<16x16xf32>
    %78 = vector.shape_cast %77 : vector<16x16xf32> to vector<1x16x16xf32>
    %79 = vector.broadcast %78 : vector<1x16x16xf32> to vector<2x16x16xf32>
    %80 = arith.addf %75, %79 : vector<2x16x16xf32>
    %cst_28 = arith.constant dense<0xFF800000> : vector<2x16xf32>
    %81 = vector.multi_reduction <maximumf>, %80, %cst_28 [2] : vector<2x16x16xf32> to vector<2x16xf32>
    %82 = vector.shape_cast %81 : vector<2x16xf32> to vector<2x16x1xf32>
    %83 = vector.broadcast %82 : vector<2x16x1xf32> to vector<2x16x16xf32>
    %84 = arith.subf %80, %83 : vector<2x16x16xf32>
    %85 = math.exp %84 : vector<2x16x16xf32>
    %cst_29 = arith.constant dense<0.000000e+00> : vector<2x16xf32>
    %86 = vector.multi_reduction <add>, %85, %cst_29 [2] : vector<2x16x16xf32> to vector<2x16xf32>
    %87 = vector.shape_cast %86 : vector<2x16xf32> to vector<2x16x1xf32>
    %88 = tpu.reciprocal %87 {approx = true} : vector<2x16x1xf32> -> vector<2x16x1xf32>
    %89 = vector.broadcast %88 : vector<2x16x1xf32> to vector<2x16x16xf32>
    %90 = arith.mulf %85, %89 : vector<2x16x16xf32>
    %91 = arith.truncf %90 : vector<2x16x16xf32> to vector<2x16x16xbf16>
    "tpu.trace_start"() <{level = 10 : i32, message = "bqk,bkd->bqd"}> : () -> ()
    %cst_30 = arith.constant dense<0.000000e+00> : vector<2x16x8xf32>
    %92 = tpu.matmul %91, %74, %cst_30 {dimension_numbers = #tpu.dot_dimension_numbers<[2], [1], [1], [2], [0, 0, 0, 1, 1, 2], [0], [0]>} : vector<2x16x16xbf16>, vector<2x16x8xbf16>, vector<2x16x8xf32> -> vector<2x16x8xf32>
    "tpu.trace_stop"() : () -> ()
    %93 = vector.shape_cast %92 : vector<2x16x8xf32> to vector<32x8xf32>
    %94 = arith.truncf %93 : vector<32x8xf32> to vector<32x8xbf16>
    %c0_31 = arith.constant 0 : index
    %c8 = arith.constant 8 : index
    %95 = vector.load %arg16[%c0_31, %c8] : memref<32x32xbf16, #tpu.memory_space<vmem>>, vector<32x8xbf16>
    tpu.vector_store %arg16[%c0_31, %c8], %94 {strides = array<i32>} : memref<32x32xbf16, #tpu.memory_space<vmem>>, vector<32x8xbf16>,
    %96 = vector.extract_strided_slice %33 {offsets = [0, 48], sizes = [32, 24], strides = [1, 1]} : vector<32x96xf32> to vector<32x24xf32>
    %97 = vector.extract_strided_slice %96 {offsets = [0, 0], sizes = [32, 8], strides = [1, 1]} : vector<32x24xf32> to vector<32x8xf32>
    %98 = vector.shape_cast %97 : vector<32x8xf32> to vector<2x16x8xf32>
    %99 = vector.extract_strided_slice %96 {offsets = [0, 8], sizes = [32, 8], strides = [1, 1]} : vector<32x24xf32> to vector<32x8xf32>
    %100 = vector.shape_cast %99 : vector<32x8xf32> to vector<2x16x8xf32>
    %101 = vector.extract_strided_slice %96 {offsets = [0, 16], sizes = [32, 8], strides = [1, 1]} : vector<32x24xf32> to vector<32x8xf32>
    %102 = vector.shape_cast %101 : vector<32x8xf32> to vector<2x16x8xf32>
    %103 = arith.truncf %98 : vector<2x16x8xf32> to vector<2x16x8xbf16>
    %104 = arith.truncf %100 : vector<2x16x8xf32> to vector<2x16x8xbf16>
    %105 = arith.truncf %102 : vector<2x16x8xf32> to vector<2x16x8xbf16>
    "tpu.trace_start"() <{level = 10 : i32, message = "bqd,bkd->bqk"}> : () -> ()
    %cst_32 = arith.constant dense<0.000000e+00> : vector<2x16x16xf32>
    %106 = tpu.matmul %103, %104, %cst_32 {dimension_numbers = #tpu.dot_dimension_numbers<[2], [2], [1], [1], [0, 0, 0, 1, 1, 1], [0], [0]>} : vector<2x16x8xbf16>, vector<2x16x8xbf16>, vector<2x16x16xf32> -> vector<2x16x16xf32>
    "tpu.trace_stop"() : () -> ()
    %c2 = arith.constant 2 : index
    %c0_33 = arith.constant 0 : index
    %c0_34 = arith.constant 0 : index
    %107 = vector.load %arg6[%c2, %c0_33, %c0_34] : memref<4x16x16xf32, #tpu.memory_space<vmem>>, vector<1x16x16xf32>
    %108 = vector.shape_cast %107 : vector<1x16x16xf32> to vector<16x16xf32>
    %109 = vector.shape_cast %108 : vector<16x16xf32> to vector<1x16x16xf32>
    %110 = vector.broadcast %109 : vector<1x16x16xf32> to vector<2x16x16xf32>
    %111 = arith.addf %106, %110 : vector<2x16x16xf32>
    %cst_35 = arith.constant dense<0xFF800000> : vector<2x16xf32>
    %112 = vector.multi_reduction <maximumf>, %111, %cst_35 [2] : vector<2x16x16xf32> to vector<2x16xf32>
    %113 = vector.shape_cast %112 : vector<2x16xf32> to vector<2x16x1xf32>
    %114 = vector.broadcast %113 : vector<2x16x1xf32> to vector<2x16x16xf32>
    %115 = arith.subf %111, %114 : vector<2x16x16xf32>
    %116 = math.exp %115 : vector<2x16x16xf32>
    %cst_36 = arith.constant dense<0.000000e+00> : vector<2x16xf32>
    %117 = vector.multi_reduction <add>, %116, %cst_36 [2] : vector<2x16x16xf32> to vector<2x16xf32>
    %118 = vector.shape_cast %117 : vector<2x16xf32> to vector<2x16x1xf32>
    %119 = tpu.reciprocal %118 {approx = true} : vector<2x16x1xf32> -> vector<2x16x1xf32>
    %120 = vector.broadcast %119 : vector<2x16x1xf32> to vector<2x16x16xf32>
    %121 = arith.mulf %116, %120 : vector<2x16x16xf32>
    %122 = arith.truncf %121 : vector<2x16x16xf32> to vector<2x16x16xbf16>
    "tpu.trace_start"() <{level = 10 : i32, message = "bqk,bkd->bqd"}> : () -> ()
    %cst_37 = arith.constant dense<0.000000e+00> : vector<2x16x8xf32>
    %123 = tpu.matmul %122, %105, %cst_37 {dimension_numbers = #tpu.dot_dimension_numbers<[2], [1], [1], [2], [0, 0, 0, 1, 1, 2], [0], [0]>} : vector<2x16x16xbf16>, vector<2x16x8xbf16>, vector<2x16x8xf32> -> vector<2x16x8xf32>
    "tpu.trace_stop"() : () -> ()
    %124 = vector.shape_cast %123 : vector<2x16x8xf32> to vector<32x8xf32>
    %125 = arith.truncf %124 : vector<32x8xf32> to vector<32x8xbf16>
    %c0_38 = arith.constant 0 : index
    %c16 = arith.constant 16 : index
    %126 = vector.load %arg16[%c0_38, %c16] : memref<32x32xbf16, #tpu.memory_space<vmem>>, vector<32x8xbf16>
    tpu.vector_store %arg16[%c0_38, %c16], %125 {strides = array<i32>} : memref<32x32xbf16, #tpu.memory_space<vmem>>, vector<32x8xbf16>,
    %127 = vector.extract_strided_slice %33 {offsets = [0, 72], sizes = [32, 24], strides = [1, 1]} : vector<32x96xf32> to vector<32x24xf32>
    %128 = vector.extract_strided_slice %127 {offsets = [0, 0], sizes = [32, 8], strides = [1, 1]} : vector<32x24xf32> to vector<32x8xf32>
    %129 = vector.shape_cast %128 : vector<32x8xf32> to vector<2x16x8xf32>
    %130 = vector.extract_strided_slice %127 {offsets = [0, 8], sizes = [32, 8], strides = [1, 1]} : vector<32x24xf32> to vector<32x8xf32>
    %131 = vector.shape_cast %130 : vector<32x8xf32> to vector<2x16x8xf32>
    %132 = vector.extract_strided_slice %127 {offsets = [0, 16], sizes = [32, 8], strides = [1, 1]} : vector<32x24xf32> to vector<32x8xf32>
    %133 = vector.shape_cast %132 : vector<32x8xf32> to vector<2x16x8xf32>
    %134 = arith.truncf %129 : vector<2x16x8xf32> to vector<2x16x8xbf16>
    %135 = arith.truncf %131 : vector<2x16x8xf32> to vector<2x16x8xbf16>
    %136 = arith.truncf %133 : vector<2x16x8xf32> to vector<2x16x8xbf16>
    "tpu.trace_start"() <{level = 10 : i32, message = "bqd,bkd->bqk"}> : () -> ()
    %cst_39 = arith.constant dense<0.000000e+00> : vector<2x16x16xf32>
    %137 = tpu.matmul %134, %135, %cst_39 {dimension_numbers = #tpu.dot_dimension_numbers<[2], [2], [1], [1], [0, 0, 0, 1, 1, 1], [0], [0]>} : vector<2x16x8xbf16>, vector<2x16x8xbf16>, vector<2x16x16xf32> -> vector<2x16x16xf32>
    "tpu.trace_stop"() : () -> ()
    %c3 = arith.constant 3 : index
    %c0_40 = arith.constant 0 : index
    %c0_41 = arith.constant 0 : index
    %138 = vector.load %arg6[%c3, %c0_40, %c0_41] : memref<4x16x16xf32, #tpu.memory_space<vmem>>, vector<1x16x16xf32>
    %139 = vector.shape_cast %138 : vector<1x16x16xf32> to vector<16x16xf32>
    %140 = vector.shape_cast %139 : vector<16x16xf32> to vector<1x16x16xf32>
    %141 = vector.broadcast %140 : vector<1x16x16xf32> to vector<2x16x16xf32>
    %142 = arith.addf %137, %141 : vector<2x16x16xf32>
    %cst_42 = arith.constant dense<0xFF800000> : vector<2x16xf32>
    %143 = vector.multi_reduction <maximumf>, %142, %cst_42 [2] : vector<2x16x16xf32> to vector<2x16xf32>
    %144 = vector.shape_cast %143 : vector<2x16xf32> to vector<2x16x1xf32>
    %145 = vector.broadcast %144 : vector<2x16x1xf32> to vector<2x16x16xf32>
    %146 = arith.subf %142, %145 : vector<2x16x16xf32>
    %147 = math.exp %146 : vector<2x16x16xf32>
    %cst_43 = arith.constant dense<0.000000e+00> : vector<2x16xf32>
    %148 = vector.multi_reduction <add>, %147, %cst_43 [2] : vector<2x16x16xf32> to vector<2x16xf32>
    %149 = vector.shape_cast %148 : vector<2x16xf32> to vector<2x16x1xf32>
    %150 = tpu.reciprocal %149 {approx = true} : vector<2x16x1xf32> -> vector<2x16x1xf32>
    %151 = vector.broadcast %150 : vector<2x16x1xf32> to vector<2x16x16xf32>
    %152 = arith.mulf %147, %151 : vector<2x16x16xf32>
    %153 = arith.truncf %152 : vector<2x16x16xf32> to vector<2x16x16xbf16>
    "tpu.trace_start"() <{level = 10 : i32, message = "bqk,bkd->bqd"}> : () -> ()
    %cst_44 = arith.constant dense<0.000000e+00> : vector<2x16x8xf32>
    %154 = tpu.matmul %153, %136, %cst_44 {dimension_numbers = #tpu.dot_dimension_numbers<[2], [1], [1], [2], [0, 0, 0, 1, 1, 2], [0], [0]>} : vector<2x16x16xbf16>, vector<2x16x8xbf16>, vector<2x16x8xf32> -> vector<2x16x8xf32>
    "tpu.trace_stop"() : () -> ()
    %155 = vector.shape_cast %154 : vector<2x16x8xf32> to vector<32x8xf32>
    %156 = arith.truncf %155 : vector<32x8xf32> to vector<32x8xbf16>
    %c0_45 = arith.constant 0 : index
    %c24 = arith.constant 24 : index
    %157 = vector.load %arg16[%c0_45, %c24] : memref<32x32xbf16, #tpu.memory_space<vmem>>, vector<32x8xbf16>
    tpu.vector_store %arg16[%c0_45, %c24], %156 {strides = array<i32>} : memref<32x32xbf16, #tpu.memory_space<vmem>>, vector<32x8xbf16>,
    %c0_46 = arith.constant 0 : index
    %c0_47 = arith.constant 0 : index
    %158 = vector.load %arg16[%c0_46, %c0_47] : memref<32x32xbf16, #tpu.memory_space<vmem>>, vector<32x32xbf16>
    %c0_48 = arith.constant 0 : index
    %c0_49 = arith.constant 0 : index
    %159 = vector.load %arg7[%c0_48, %c0_49] : memref<32x32xbf16, #tpu.memory_space<vmem>>, vector<32x32xbf16>
    %cst_50 = arith.constant dense<0.000000e+00> : vector<32x32xf32>
    %160 = tpu.matmul %158, %159, %cst_50 {dimension_numbers = #tpu.dot_dimension_numbers<[1], [0], [0], [1], [0, 0, 1, 1], [], []>} : vector<32x32xbf16>, vector<32x32xbf16>, vector<32x32xf32> -> vector<32x32xf32>
    %c0_51 = arith.constant 0 : index
    %c0_52 = arith.constant 0 : index
    %161 = vector.load %arg8[%c0_51, %c0_52] : memref<1x32xf32, #tpu.memory_space<vmem>>, vector<1x32xf32>
    %162 = vector.broadcast %161 : vector<1x32xf32> to vector<32x32xf32>
    %163 = arith.addf %160, %162 : vector<32x32xf32>
    %164 = arith.addf %1, %163 : vector<32x32xf32>
    %c0_53 = arith.constant 0 : index
    %c0_54 = arith.constant 0 : index
    %165 = vector.load %arg9[%c0_53, %c0_54] : memref<1x32xf32, #tpu.memory_space<vmem>>, vector<1x32xf32>
    %c0_55 = arith.constant 0 : index
    %c0_56 = arith.constant 0 : index
    %166 = vector.load %arg10[%c0_55, %c0_56] : memref<1x32xf32, #tpu.memory_space<vmem>>, vector<1x32xf32>
    %cst_57 = arith.constant dense<0.000000e+00> : vector<32xf32>
    %167 = vector.multi_reduction <add>, %164, %cst_57 [1] : vector<32x32xf32> to vector<32xf32>
    %168 = vector.shape_cast %167 : vector<32xf32> to vector<32x1xf32>
    %cst_58 = arith.constant 3.200000e+01 : f32
    %169 = vector.broadcast %cst_58 : f32 to vector<32x1xf32>
    %170 = arith.divf %168, %169 : vector<32x1xf32>
    %171 = arith.mulf %164, %164 : vector<32x32xf32>
    %cst_59 = arith.constant dense<0.000000e+00> : vector<32xf32>
    %172 = vector.multi_reduction <add>, %171, %cst_59 [1] : vector<32x32xf32> to vector<32xf32>
    %173 = vector.shape_cast %172 : vector<32xf32> to vector<32x1xf32>
    %cst_60 = arith.constant 3.200000e+01 : f32
    %174 = vector.broadcast %cst_60 : f32 to vector<32x1xf32>
    %175 = arith.divf %173, %174 : vector<32x1xf32>
    %176 = arith.mulf %170, %170 : vector<32x1xf32>
    %177 = arith.subf %175, %176 : vector<32x1xf32>
    %cst_61 = arith.constant 0.000000e+00 : f32
    %178 = vector.broadcast %cst_61 : f32 to vector<32x1xf32>
    %179 = arith.maximumf %177, %178 : vector<32x1xf32>
    %180 = vector.broadcast %170 : vector<32x1xf32> to vector<32x32xf32>
    %181 = arith.subf %164, %180 : vector<32x32xf32>
    %cst_62 = arith.constant 9.99999974E-6 : f32
    %182 = vector.broadcast %cst_62 : f32 to vector<32x1xf32>
    %183 = arith.addf %179, %182 : vector<32x1xf32>
    %184 = math.rsqrt %183 : vector<32x1xf32>
    %185 = vector.broadcast %184 : vector<32x1xf32> to vector<32x32xf32>
    %186 = arith.mulf %181, %185 : vector<32x32xf32>
    %187 = vector.broadcast %165 : vector<1x32xf32> to vector<32x32xf32>
    %188 = arith.mulf %186, %187 : vector<32x32xf32>
    %189 = vector.broadcast %166 : vector<1x32xf32> to vector<32x32xf32>
    %190 = arith.addf %188, %189 : vector<32x32xf32>
    %191 = arith.truncf %190 : vector<32x32xf32> to vector<32x32xbf16>
    %c0_63 = arith.constant 0 : index
    %c0_64 = arith.constant 0 : index
    %192 = vector.load %arg11[%c0_63, %c0_64] : memref<32x128xbf16, #tpu.memory_space<vmem>>, vector<32x128xbf16>
    %cst_65 = arith.constant dense<0.000000e+00> : vector<32x128xf32>
    %193 = tpu.matmul %191, %192, %cst_65 {dimension_numbers = #tpu.dot_dimension_numbers<[1], [0], [0], [1], [0, 0, 1, 1], [], []>} : vector<32x32xbf16>, vector<32x128xbf16>, vector<32x128xf32> -> vector<32x128xf32>
    %c0_66 = arith.constant 0 : index
    %c0_67 = arith.constant 0 : index
    %194 = vector.load %arg12[%c0_66, %c0_67] : memref<1x128xf32, #tpu.memory_space<vmem>>, vector<1x128xf32>
    %195 = vector.broadcast %194 : vector<1x128xf32> to vector<32x128xf32>
    %196 = arith.addf %193, %195 : vector<32x128xf32>
    %cst_68 = arith.constant 5.000000e-01 : f32
    %197 = vector.broadcast %cst_68 : f32 to vector<32x128xf32>
    %198 = arith.mulf %197, %196 : vector<32x128xf32>
    %cst_69 = arith.constant 0.707106769 : f32
    %199 = vector.broadcast %cst_69 : f32 to vector<32x128xf32>
    %200 = arith.mulf %196, %199 : vector<32x128xf32>
    %201 = math.erf %200 : vector<32x128xf32>
    %cst_70 = arith.constant 1.000000e+00 : f32
    %202 = vector.broadcast %cst_70 : f32 to vector<32x128xf32>
    %203 = arith.addf %202, %201 : vector<32x128xf32>
    %204 = arith.mulf %198, %203 : vector<32x128xf32>
    %205 = arith.truncf %204 : vector<32x128xf32> to vector<32x128xbf16>
    %c0_71 = arith.constant 0 : index
    %c0_72 = arith.constant 0 : index
    %206 = vector.load %arg13[%c0_71, %c0_72] : memref<128x32xbf16, #tpu.memory_space<vmem>>, vector<128x32xbf16>
    %cst_73 = arith.constant dense<0.000000e+00> : vector<32x32xf32>
    %207 = tpu.matmul %205, %206, %cst_73 {dimension_numbers = #tpu.dot_dimension_numbers<[1], [0], [0], [1], [0, 0, 1, 1], [], []>} : vector<32x128xbf16>, vector<128x32xbf16>, vector<32x32xf32> -> vector<32x32xf32>
    %c0_74 = arith.constant 0 : index
    %c0_75 = arith.constant 0 : index
    %208 = vector.load %arg14[%c0_74, %c0_75] : memref<1x32xf32, #tpu.memory_space<vmem>>, vector<1x32xf32>
    %209 = vector.broadcast %208 : vector<1x32xf32> to vector<32x32xf32>
    %210 = arith.addf %207, %209 : vector<32x32xf32>
    %211 = arith.addf %164, %210 : vector<32x32xf32>
    %212 = vector.shape_cast %211 : vector<32x32xf32> to vector<2x16x32xf32>
    %c0_76 = arith.constant 0 : index
    %c0_77 = arith.constant 0 : index
    %c0_78 = arith.constant 0 : index
    %213 = vector.load %arg15[%c0_76, %c0_77, %c0_78] : memref<2x16x32xf32, #tpu.memory_space<vmem>>, vector<2x16x32xf32>
    tpu.vector_store %arg15[%c0_76, %c0_77, %c0_78], %212 {strides = array<i32>} : memref<2x16x32xf32, #tpu.memory_space<vmem>>, vector<2x16x32xf32>,
    return
  }
  func.func @transform_0(%arg0: i32) -> (i32, i32, i32) {
    %c0_i32 = arith.constant 0 : i32
    %c0_i32_0 = arith.constant 0 : i32
    %c0_i32_1 = arith.constant 0 : i32
    return %arg0, %c0_i32, %c0_i32_0 : i32, i32, i32
  }
  func.func @transform_1(%arg0: i32) -> (i32, i32) {
    %c0_i32 = arith.constant 0 : i32
    %c0_i32_0 = arith.constant 0 : i32
    %c0_i32_1 = arith.constant 0 : i32
    return %c0_i32, %c0_i32_0 : i32, i32
  }
  func.func @transform_2(%arg0: i32) -> (i32, i32) {
    %c0_i32 = arith.constant 0 : i32
    %c0_i32_0 = arith.constant 0 : i32
    %c0_i32_1 = arith.constant 0 : i32
    return %c0_i32, %c0_i32_0 : i32, i32
  }
  func.func @transform_3(%arg0: i32) -> (i32, i32) {
    %c0_i32 = arith.constant 0 : i32
    %c0_i32_0 = arith.constant 0 : i32
    %c0_i32_1 = arith.constant 0 : i32
    return %c0_i32, %c0_i32_0 : i32, i32
  }
  func.func @transform_4(%arg0: i32) -> (i32, i32) {
    %c0_i32 = arith.constant 0 : i32
    %c0_i32_0 = arith.constant 0 : i32
    %c0_i32_1 = arith.constant 0 : i32
    return %c0_i32, %c0_i32_0 : i32, i32
  }
  func.func @transform_5(%arg0: i32) -> (i32, i32, i32) {
    %c0_i32 = arith.constant 0 : i32
    %c0_i32_0 = arith.constant 0 : i32
    %c0_i32_1 = arith.constant 0 : i32
    %c0_i32_2 = arith.constant 0 : i32
    return %c0_i32, %c0_i32_0, %c0_i32_1 : i32, i32, i32
  }
  func.func @transform_6(%arg0: i32) -> (i32, i32) {
    %c0_i32 = arith.constant 0 : i32
    %c0_i32_0 = arith.constant 0 : i32
    %c0_i32_1 = arith.constant 0 : i32
    return %c0_i32, %c0_i32_0 : i32, i32
  }
  func.func @transform_7(%arg0: i32) -> (i32, i32) {
    %c0_i32 = arith.constant 0 : i32
    %c0_i32_0 = arith.constant 0 : i32
    %c0_i32_1 = arith.constant 0 : i32
    return %c0_i32, %c0_i32_0 : i32, i32
  }
  func.func @transform_8(%arg0: i32) -> (i32, i32) {
    %c0_i32 = arith.constant 0 : i32
    %c0_i32_0 = arith.constant 0 : i32
    %c0_i32_1 = arith.constant 0 : i32
    return %c0_i32, %c0_i32_0 : i32, i32
  }
  func.func @transform_9(%arg0: i32) -> (i32, i32) {
    %c0_i32 = arith.constant 0 : i32
    %c0_i32_0 = arith.constant 0 : i32
    %c0_i32_1 = arith.constant 0 : i32
    return %c0_i32, %c0_i32_0 : i32, i32
  }
  func.func @transform_10(%arg0: i32) -> (i32, i32) {
    %c0_i32 = arith.constant 0 : i32
    %c0_i32_0 = arith.constant 0 : i32
    %c0_i32_1 = arith.constant 0 : i32
    return %c0_i32, %c0_i32_0 : i32, i32
  }
  func.func @transform_11(%arg0: i32) -> (i32, i32) {
    %c0_i32 = arith.constant 0 : i32
    %c0_i32_0 = arith.constant 0 : i32
    %c0_i32_1 = arith.constant 0 : i32
    return %c0_i32, %c0_i32_0 : i32, i32
  }
  func.func @transform_12(%arg0: i32) -> (i32, i32) {
    %c0_i32 = arith.constant 0 : i32
    %c0_i32_0 = arith.constant 0 : i32
    %c0_i32_1 = arith.constant 0 : i32
    return %c0_i32, %c0_i32_0 : i32, i32
  }
  func.func @transform_13(%arg0: i32) -> (i32, i32) {
    %c0_i32 = arith.constant 0 : i32
    %c0_i32_0 = arith.constant 0 : i32
    %c0_i32_1 = arith.constant 0 : i32
    return %c0_i32, %c0_i32_0 : i32, i32
  }
  func.func @transform_14(%arg0: i32) -> (i32, i32, i32) {
    %c0_i32 = arith.constant 0 : i32
    %c0_i32_0 = arith.constant 0 : i32
    %c0_i32_1 = arith.constant 0 : i32
    return %arg0, %c0_i32, %c0_i32_0 : i32, i32, i32
  }
}

</mosaic_0001>

<bundles_post_ra>
// kernel: tpu_custom_call.1
= control target key start
LH: loop header
LB: loop body
LE: loop exit
PB: predicated region body
PF: predicated region fallthrough
CT: control target
= control target key end

     0   :  { %s3716_s0 = inlined_call_operand.hbm [shape: f32[8,16,32], index: 0, kind: input, shape index: {}]   ;;  %s3717_s1 = inlined_call_operand.vmem [shape: f32[1,32], index: 1, kind: input, shape index: {}]   ;;  %s3718_s2 = inlined_call_operand.vmem [shape: f32[1,32], index: 2, kind: input, shape index: {}]   ;;  %s3719_s3 = inlined_call_operand.vmem [shape: bf16[32,96], index: 3, kind: input, shape index: {}]   ;;  %s3720_s4 = inlined_call_operand.vmem [shape: f32[1,96], index: 4, kind: input, shape index: {}]   ;;  %s3721_s5 = inlined_call_operand.vmem [shape: f32[4,16,16], index: 5, kind: input, shape index: {}]   ;;  %s3722_s6 = inlined_call_operand.hbm [shape: bf16[32,32], index: 6, kind: input, shape index: {}]   ;;  %s3723_s7 = inlined_call_operand.vmem [shape: f32[1,32], index: 7, kind: input, shape index: {}]   ;;  %s3724_s8 = inlined_call_operand.vmem [shape: f32[1,32], index: 8, kind: input, shape index: {}]   ;;  %s3725_s9 = inlined_call_operand.hbm [shape: f32[1,32], index: 9, kind: input, shape index: {}]   ;;  %s3726_s10 = inlined_call_operand.hbm [shape: bf16[32,128], index: 10, kind: input, shape index: {}]   ;;  %s3727_s11 = inlined_call_operand.hbm [shape: f32[1,128], index: 11, kind: input, shape index: {}]   ;;  %s3728_s12 = inlined_call_operand.vmem [shape: bf16[128,32], index: 12, kind: input, shape index: {}]   ;;  %s3729_s13 = inlined_call_operand.vmem [shape: f32[1,32], index: 13, kind: input, shape index: {}]   ;;  %s3730_s14 = inlined_call_operand.hbm [shape: f32[8,16,32], index: 14, kind: output, shape index: {}]  }
   0x1   :  { %3738 = sst [smem:[#allocation20_spill]] %s3722_s6 }
   0x2   :  { %3739 = sst [smem:[#allocation21_spill]] %s3725_s9 }
   0x3   :  { %3740 = sst [smem:[#allocation22_spill]] %s3726_s10 }
   0x4   :  { %3741 = sst [smem:[#allocation23_spill]] %s3727_s11 }
   0x5   :  { %3742 = sst [smem:[#allocation24_spill]] %s3730_s14 }
   0x6   :  { %19 = vsyncpa [#allocation4], 0 }
   0x7   :  { %21 = vsyncpa [#allocation4 + $0x1], 0 }
   0x8   :  { %22 = vsyncpa [#allocation7], 0 }
   0x9   :  { %23 = vsyncpa [#allocation10], 0 }
   0xa   :  { %24 = vsyncpa [#allocation5], 0 }
   0xb   :  { %26 = vsyncpa [#allocation5 + $0x1], 0  ;;  %s3173_s29 = smov 0   ;;  %s3175_s30 = smov 0  }
   0xc   :  { %s3177_s15 = smov 0   ;;  %s3179_s16 = smov 0  }
   0xd LB: > { %3743 = sst [smem:[#allocation17_spill]] %s3057_s29  ;;  %s3194_s17 = sadd.s32 4294967295, %s3069_s16   ;;  %s3069_s16 = sphi %s3179_s16, %s3772_s16   ;;  %s3065_s15 = sphi %s3177_s15, %s3771_s15   ;;  %s3061_s30 = sphi %s3175_s30, %s3770_s30   ;;  %s3057_s29 = sphi %s3173_s29, %s3769_s29  }
   0xe   : > { %s2343_s18 = sadd.s32 4294967294, %s3069_s16   ;;  %p52_p0 = scmp.ne.s32.totalorder %s3061_s30, %s3057_s29 }
   0xf   : > { %p3733_p1 = scmp.eq.s32.totalorder %s3194_s17, 0  ;;  %p355_p3 = scmp.eq.s32.totalorder %s2343_s18, 3 }
  0x10   : > { %p2344_p5 = scmp.ge.s32.totalorder %s3069_s16, 1  ;;  %p362_p7 = scmp.lt.s32.totalorder %s3069_s16, 5 }
  0x11   : > { %p3203_p4 = por %p3733_p1, %p52_p0  ;;  %p3208_p6 = por %p355_p3, %p52_p0 }
  0x12   : > { %p3213_p8 = pnand %p2344_p5, %p362_p7  ;;  %s3071_s22 = smov [#allocation6]  }
  0x13   : > { %s3744_s19 = scalar_select %p3203_p4, 1, 0 }
  0x14   : > { %s3745_s20 = scalar_select %p3208_p6, 1, 0 }
  0x15   : > { %s3747_s21 = scalar_select %p3213_p8, 1, 0 }
  0x16   : > { %3746 = sst [smem:[#allocation18_spill]] %s3745_s20  ;;  %s389_s23 = sshll.u32 %s3071_s22, 4  ;;  %s390_s23 = int_to_ptr.vmem [resolvable:$true] %s389_s23 }
  0x17   : > { %p2669_p9 = pneg %p3213_p8  ;;  %s3072_s25 = smov [#allocation9]  }
  0x18   : > { %s419_s26 = sshll.u32 %s3072_s25, 4  ;;  %s3073_s27 = smov [#allocation8]   ;;  %s420_s26 = int_to_ptr.vmem [resolvable:$true] %s419_s26 }
  0x19   : > { %p3221_p10 = pnand %p2669_p9, %p3733_p1  ;;  %s409_s28 = sshll.u32 %s3073_s27, 4  ;;  %s410_s28 = int_to_ptr.vmem [resolvable:$true] %s409_s28 }
  0x1a   : > { %s2876_s18 = scalar_lea.vmem %s390_s23, 256  ;;  %p2884_p3 = scmp.lt.s32.totalorder %s390_s23, %s390_s23 }
  0x1b   : > { %p2867_p11 = pneg %p3221_p10  ;;  %p2877_p12 = scmp.ne.s32.totalorder %s390_s23, %s2876_s18 }
  0x1c   : > { %p2885_p5 = scmp.lt.s32.totalorder %s2876_s18, %s2876_s18 }
  0x1d   : > { %p2879_p13 = pnand %p2877_p12, %p2867_p11 }
  0x1e   : > { %p2886_p7 = por %p2885_p5, %p2884_p3 }
  0x1f   : > { %p2880_p0 = pneg %p2879_p13 }
  0x21   : > { %p2887_p9 = pnand %p2886_p7, %p2880_p0 }
  0x23   : > { %2890 = shalt.err (!%p2887_p9)
}
  0x24   : > { %s3074_s22 = smov 64   ;;  %s3075_s25 = smov 4  }
  0x25   : > { %s3749_s6 = sld [smem:[#allocation20_spill]]  ;;  %s2902_s29 = scalar_lea.vmem %s420_s26, 256 }
  0x26   : > { %p2903_p1 = scmp.ne.s32.totalorder %s420_s26, %s2902_s29  ;;  %p2910_p2 = scmp.lt.s32.totalorder %s420_s26, %s420_s26 }
  0x27   : > { %p2911_p6 = scmp.lt.s32.totalorder %s2902_s29, %s2902_s29 }
  0x28   : > { %p2905_p12 = pnand %p2903_p1, %p2867_p11 }
  0x29   : > { %p2912_p3 = por %p2911_p6, %p2910_p2 }
  0x2a   : > { %p2906_p13 = pneg %p2905_p12 }
  0x2b   : > { %2672 = dma.hbm_to_vmem [thread:$0]  (!%p3221_p10), %s3749_s6, 256, %s390_s23, [#allocation7], %s3074_s22, %s3074_s22, %s3075_s25  }
  0x2c   : > { %p2913_p0 = pnand %p2912_p3, %p2906_p13 }
  0x2e   : > { %2916 = shalt.err (!%p2913_p0)
}
  0x2f   : > { %s3750_s10 = sld [smem:[#allocation22_spill]]  ;;  %s2928_s20 = scalar_lea.vmem %s410_s28, 16 }
  0x30   : > { %p2929_p5 = scmp.ne.s32.totalorder %s410_s28, %s2928_s20  ;;  %s2935_s23 = scalar_lea.vmem %s410_s28, 32 }
  0x31   : > { %p2936_p9 = scmp.lt.s32.totalorder %s410_s28, %s410_s28  ;;  %p2937_p12 = scmp.lt.s32.totalorder %s2935_s23, %s2928_s20 }
  0x32   : > { %p2931_p7 = pnand %p2929_p5, %p2867_p11 }
  0x33   : > { %p2938_p2 = por %p2937_p12, %p2936_p9 }
  0x34   : > { %p2932_p1 = pneg %p2931_p7 }
  0x35   : > { %2678 = dma.hbm_to_vmem [thread:$0]  (!%p3221_p10), %s3750_s10, 256, %s420_s26, [#allocation10], %s3074_s22, %s3074_s22, %s3075_s25  }
  0x36   : > { %p2939_p6 = pnand %p2938_p2, %p2932_p1 }
  0x38   : > { %2942 = shalt.err (!%p2939_p6)
}
  0x39   : > { %s3751_s9 = sld [smem:[#allocation21_spill]]  ;;  %s3076_s14 = smov [#allocation11]  }
  0x3a   : > { %s433_s26 = sshll.u32 %s3076_s14, 4  ;;  %s434_s26 = int_to_ptr.vmem [resolvable:$true] %s433_s26 }
  0x3b   : > { %s2954_s22 = scalar_lea.vmem %s434_s26, 16  ;;  %s2961_s25 = scalar_lea.vmem %s434_s26, 32 }
  0x3c   : > { %p2955_p13 = scmp.ne.s32.totalorder %s434_s26, %s2954_s22  ;;  %p2962_p5 = scmp.lt.s32.totalorder %s434_s26, %s434_s26 }
  0x3d   : > { %p2963_p7 = scmp.lt.s32.totalorder %s2961_s25, %s2954_s22 }
  0x3e   : > { %p2957_p3 = pnand %p2955_p13, %p2867_p11 }
  0x3f   : > { %2675 = dma.hbm_to_vmem [thread:$0]  (!%p3221_p10), %s3751_s9, 16, %s410_s28, [#allocation7]  }
  0x40   : > { %p2958_p0 = pneg %p2957_p3  ;;  %p2964_p1 = por %p2963_p7, %p2962_p5 }
  0x42   : > { %p2965_p9 = pnand %p2964_p1, %p2958_p0 }
  0x44   : > { %2968 = shalt.err (!%p2965_p9)
}
  0x45   : > { %s3752_s11 = sld [smem:[#allocation23_spill]]  ;;  %s3260_s28 = sadd.s32 1, %s3069_s16  }
  0x46   : > { %s39_s23 = sadd.s32 1, %s3065_s15  ;;  %s36_s24 = ssub.s32 %s3069_s16, %s3260_s28 }
  0x47   : > { %p46_p11 = scmp.ne.s32.totalorder %s3065_s15, %s3061_s30  ;;  %p37_p12 = scmp.eq.s32.totalorder %s36_s24, 0 }
  0x48   : > { %p47_p2 = scmp.eq.s32.totalorder %s3069_s16, 0  ;;  %p3753_p6 = scmp.eq.s32.totalorder %s3194_s17, 3 }
  0x49   : > { %p2694_p3 = scmp.lt.s32.totalorder %s3069_s16, 4  ;;  %s450_s14 = sand.u32 1, %s3065_s15  }
  0x4a   : > { %p3270_p13 = por %p3753_p6, %p46_p11  ;;  %p48_p0 = por %p47_p2, %p46_p11 }
  0x4b   : > { %2681 = dma.hbm_to_vmem [thread:$0]  (!%p3221_p10), %s3752_s11, 16, %s434_s26, [#allocation10]  }
  0x4c   : > { %s3754_s29 = scalar_select %p3270_p13, 1, 0 }
  0x4d   : > { %s3276_s27 = scalar_select %p37_p12, %s3065_s15, %s39_s23  }
  0x4e   : > { %s2350_s22 = sshll.u32 %s450_s14, 5  ;;  %s2436_s26 = sshll.u32 %s3069_s16, 9 }
  0x4f   : > { %3755 = sst [smem:[#allocation19_spill]] %s3276_s27  ;;  %s3283_s20 = scalar_lea.hbm %s3716_s0, %s2436_s26 }
  0x50   : > { %s454_s24 = scalar_lea.vmem [#allocation3], %s2350_s22  ;;  %p3287_p10 = pnand %p2694_p3, %p48_p0 }
  0x51   : > { %s462_s6 = sshll.u32 %s454_s24, 4  ;;  %s3291_s23 = scalar_lea.sflag [#allocation4], %s450_s14  ;;  %s3285_s6 = int_to_ptr.vmem [resolvable:$true] %s462_s6 }
  0x52   : > { %s2969_s10 = scalar_lea.hbm %s3283_s20, 512  ;;  %p2971_p7 = pneg %p3287_p10 }
  0x53   : > { %p2970_p5 = scmp.ne.s32.totalorder %s3283_s20, %s2969_s10  ;;  %s2974_s22 = scalar_lea.hbm %s3716_s0, 2048 }
  0x54   : > { %p2975_p11 = scmp.lt.s32.totalorder %s3283_s20, %s3716_s0  ;;  %p2976_p12 = scmp.lt.s32.totalorder %s2974_s22, %s2969_s10 }
  0x55   : > { %p2972_p1 = pnand %p2971_p7, %p2970_p5 }
  0x56   : > { %p2977_p2 = por %p2976_p12, %p2975_p11 }
  0x57   : > { %p2973_p9 = pneg %p2972_p1 }
  0x59   : > { %p2978_p6 = pnand %p2977_p2, %p2973_p9 }
  0x5b   : > { %2981 = shalt.err (!%p2978_p6)
}
  0x5c   : > { %s2982_s14 = scalar_lea.vmem %s3285_s6, 512  ;;  %s3077_s11 = smov [#allocation3]  }
  0x5d   : > { %p2983_p3 = scmp.ne.s32.totalorder %s3285_s6, %s2982_s14  ;;  %s2987_s27 = sshll.u32 %s3077_s11, 4  ;;  %s2988_s27 = int_to_ptr.vmem [resolvable:$false] %s2987_s27 }
  0x5e   : > { %s2989_s26 = scalar_lea.vmem %s2988_s27, 1024  ;;  %p2990_p1 = scmp.lt.s32.totalorder %s3285_s6, %s2988_s27 }
  0x5f   : > { %p2985_p0 = pnand %p2983_p3, %p2971_p7  ;;  %p2991_p13 = scmp.lt.s32.totalorder %s2989_s26, %s2982_s14 }
  0x61   : > { %p2986_p5 = pneg %p2985_p0  ;;  %p2992_p4 = por %p2991_p13, %p2990_p1 }
  0x63   : > { %p2993_p8 = pnand %p2992_p4, %p2986_p5 }
  0x65   : > { %2996 = shalt.err (!%p2993_p8)
}
  0x66   : > { %s3078_s10 = smov 128   ;;  %s3079_s25 = smov 8  }
  0x67   : > { %2685 = dma.hbm_to_vmem [thread:$0]  (!%p3287_p10), %s3283_s20, 512, %s3285_s6, %s3291_s23, %s3078_s10, %s3078_s10, %s3079_s25  }
  0x68   : > { %p3757_p7 = scmp.ne.s32.totalorder %s3747_s21, 0 }
  0x69   : > { %s3315_s11 = sand.u32 (!%p3757_p7), 1, %s3061_s30   ;;  %p3758_p4 = scmp.ne.s32.totalorder (!%p3757_p7), %s3744_s19, 0 }
  0x6a   : > { %474 = sbr.rel (%p3757_p7) target bundleno = 3947 (0xf6b), region = 76  ;;  %s2355_s27 = sshll.u32 (!%p3757_p7), %s3315_s11, 5 }
  0x6b   : > { %s477_s22 = scalar_lea.sflag (!%p3757_p7), [#allocation4], %s3315_s11  ;;  %s3321_s18 = scalar_lea.vmem (!%p3757_p7), [#allocation3], %s2355_s27 }
  0x6f   : > { %3040 = dma.done.wait (%p3758_p4), %s477_s22, 512  }
  0x70   : > { %3042 = vsyncadd (%p3758_p4), %s477_s22, 4294966784  ;;  %p3759_p8 = scmp.eq.s32.totalorder %s3194_s17, 0 }
  0x72   : > { %3044 = dma.done.wait (%p3759_p8), [#allocation7], 272   ;;  %p3760_p13 = pmov %p3759_p8 }
  0x73   : > { %p3761_p10 = pmov %p3759_p8 }
  0x74   : > { %3046 = vsyncadd (%p3760_p13), [#allocation7], 4294967024 }
  0x75   : > { %3048 = dma.done.wait (%p3761_p10), [#allocation10], 272   ;;  %p3762_p9 = pmov %p3759_p8 }
  0x76   : > { %vm550_vm0 = vcmask 261120   ;;  %v3336_v0 = vld [vmem:[%s3321_s18 + $0x10] sm:$0xff]  ;;  %v3339_v1 = vld [vmem:[%s3321_s18] sm:$0xff]  ;;  %v3342_v2 = vld [vmem:[%s3321_s18 + $0x18] sm:$0xff]  ;;  %vm3081_vm1 = vmmov 0   ;;  %s3082_s25 = smov 120  }
  0x77   : > { %3050 = vsyncadd (%p3762_p9), [#allocation10], 4294967024  ;;  %v557_v3 = vsel %vm550_vm0, %v3336_v0, 0.0  ;;  %v551_v4 = vsel %vm550_vm0, %v3339_v1, 0.0  ;;  %v3349_v5 = vld [vmem:[%s3321_s18 + $0x8] sm:$0xff]  ;;  %v568_v6 = vmul.f32 %v3339_v1, %v3339_v1  ;;  %v571_v8 = vmul.f32 %v3342_v2, %v3342_v2  ;;  %v2757_v16 = vld [vmem:[%s3719_s3 + $0x8] sm:$0xff]  }
  0x78   : > { %558 = vadd.xlane.f32.xlu1 %v557_v3  ;;  %552 = vadd.xlane.f32.xlu0 %v551_v4  ;;  %v569_v7 = vmul.f32 %v3349_v5, %v3349_v5  ;;  %v570_v9 = vmul.f32 %v3336_v0, %v3336_v0  ;;  %v560_v10 = vsel %vm550_vm0, %v3342_v2, 0.0  ;;  %v554_v11 = vsel %vm550_vm0, %v3349_v5, 0.0  ;;  %v2758_v17 = vld [vmem:[%s3719_s3] sm:$0xff]   ;;  %s3083_s21 = smov 112   ;;  %s3084_s20 = smov 96  }
  0x79   : > { %v572_v13 = vsel %vm550_vm0, %v568_v6, 0.0  ;;  %v581_v14 = vsel %vm550_vm0, %v571_v8, 0.0  ;;  %2509 = vmatprep.subr.bf16.mxu0 %v2757_v16  ;;  %v2361_v53 = vld [vmem:[%s3717_s1] ss:$0 sm:$0xff]  ;;  %vm723_vm2 = vcmask 64512   ;;  %vm821_vm3 = vcmask 130048  }
  0x7a   : > { %v575_v12 = vsel %vm550_vm0, %v569_v7, 0.0  ;;  %v578_v15 = vsel %vm550_vm0, %v570_v9, 0.0  ;;  %2510 = vmatpush3.bf16.msra.mxu0 %v2757_v16  ;;  %v2362_v56 = vld [vmem:[%s3718_s2] ss:$0 sm:$0xff]  ;;  %s3085_s23 = smov 104   ;;  %vm978_vm4 = vcmask 60416  }
  0x7b   : > { %2511 = vmatprep.subr.bf16.mxu0 %v2758_v17  ;;  %s3087_s22 = smov 72   ;;  %s3088_s6 = smov 80   ;;  %vm1252_vm5 = vcmask 126016   ;;  %vm1526_vm6 = vcmask 191616   ;;  %vm1800_vm7 = vcmask 257216  }
  0x7c   : > { %561 = vadd.xlane.f32.xlu1 %v560_v10  ;;  %555 = vadd.xlane.f32.xlu0 %v554_v11  ;;  %s3090_s24 = smov 48   ;;  %s3091_s14 = smov 56  }
  0x7d   : > { %s3093_s9 = smov 8   ;;  %s3094_s19 = smov 16  }
  0x7e   : > { %2512 = vmatpush3.bf16.msra.mxu0 %v2758_v17  ;;  %p3764_p12 = scmp.ne.s32.totalorder %s3754_s29, 0  ;;  %s3096_s26 = smov [#allocation12]  }
  0x7f   : > { %s3001_s10 = sshll.u32 %s3096_s26, 4  ;;  %s3002_s10 = int_to_ptr.vmem [resolvable:$false] %s3001_s10 }
  0x80   : > { %576 = vadd.xlane.f32.xlu1 %v575_v12  ;;  %573 = vadd.xlane.f32.xlu0 %v572_v13  ;;  %v2363_v12 = vld [vmem:[%s3720_s4] ss:$0 sm:$0xff] }
  0x84   : > { %582 = vadd.xlane.f32.xlu1 %v581_v14  ;;  %579 = vadd.xlane.f32.xlu0 %v578_v15 }
 0x101   : > { %v559_v18 = vpop.xlane.xlu1 %558  ;;  %v553_v19 = vpop.xlane.xlu0 %552 }
 0x102   : > { %v564_v22 = vmul.f32 0.03125, %v553_v19  ;;  %v566_v24 = vmul.f32 0.03125, %v559_v18 }
 0x104   : > { %v588_v28 = vmul.f32 %v564_v22, %v564_v22  ;;  %v590_v34 = vmul.f32 %v566_v24, %v566_v24  ;;  %v600_v52 = vsub.f32 %v3339_v1, %v564_v22  ;;  %v602_v61 = vsub.f32 %v3336_v0, %v566_v24 }
 0x105   : > { %v562_v20 = vpop.xlane.xlu1 %561  ;;  %v556_v21 = vpop.xlane.xlu0 %555 }
 0x106   : > { %v565_v23 = vmul.f32 0.03125, %v556_v21  ;;  %v567_v25 = vmul.f32 0.03125, %v562_v20 }
 0x108   : > { %v589_v29 = vmul.f32 %v565_v23, %v565_v23  ;;  %v591_v35 = vmul.f32 %v567_v25, %v567_v25  ;;  %v601_v50 = vsub.f32 %v3349_v5, %v565_v23  ;;  %v603_v58 = vsub.f32 %v3342_v2, %v567_v25 }
 0x109   : > { %v577_v26 = vpop.xlane.xlu1 %576  ;;  %v574_v27 = vpop.xlane.xlu0 %573  ;;  %v3080_v2 = vmov 0.0  }
 0x10a   : > { %v585_v30 = vmul.f32 0.03125, %v577_v26  ;;  %v584_v31 = vmul.f32 0.03125, %v574_v27  ;;  %2517 = vmatprep.subr.bf16.mxu0 %v3080_v2  ;;  %2529 = vmatprep.subr.bf16.mxu1 %v3080_v2  ;;  %v718_v26 = vld [vmem:[%s3721_s5] sm:$0xff] }
 0x10b   : > { %2531 = vmatprep.mubr.msk.bf16.mxu1 %vm3081_vm1, %v3080_v2 }
 0x10c   : > { %v593_v32 = vsub.f32 %v585_v30, %v589_v29  ;;  %v592_v33 = vsub.f32 %v584_v31, %v588_v28  ;;  %v719_v30 = vld [vmem:[%s3721_s5 + $0x8] sm:$0xff] }
 0x10d   : > { %v583_v36 = vpop.xlane.xlu1 %582  ;;  %v580_v37 = vpop.xlane.xlu0 %579 }
 0x10e   : > { %v597_v38 = vmax.f32 %v593_v32, 0.0  ;;  %v596_v39 = vmax.f32 %v592_v33, 0.0  ;;  %v587_v40 = vmul.f32 0.03125, %v583_v36  ;;  %v586_v41 = vmul.f32 0.03125, %v580_v37 }
 0x110   : > { %v605_v42 = vadd.f32 1e-05, %v597_v38  ;;  %v604_v43 = vadd.f32 1e-05, %v596_v39  ;;  %v595_v44 = vsub.f32 %v587_v40, %v591_v35  ;;  %v594_v45 = vsub.f32 %v586_v41, %v590_v34 }
 0x112   : > { %2773 = vrsqrt.f32 %v605_v42  ;;  %v599_v46 = vmax.f32 %v595_v44, 0.0  ;;  %v598_v47 = vmax.f32 %v594_v45, 0.0 }
 0x113   : > { %2775 = vrsqrt.f32 %v604_v43 }
 0x114   : > { %v607_v48 = vadd.f32 1e-05, %v599_v46  ;;  %v606_v49 = vadd.f32 1e-05, %v598_v47 }
 0x116   : > { %2777 = vrsqrt.f32 %v607_v48 }
 0x117   : > { %2779 = vrsqrt.f32 %v606_v49 }
 0x11f   : > { %v2774_v51 = vpop.eup %2773 }
 0x120   : > { %v2776_v54 = vpop.eup %2775  ;;  %v613_v55 = vmul.f32 %v2774_v51, %v601_v50 }
 0x121   : > { %v612_v57 = vmul.f32 %v2776_v54, %v600_v52 }
 0x122   : > { %v623_v59 = vmul.f32 %v2361_v53, %v613_v55 }
 0x123   : > { %v2778_v60 = vpop.eup %2777  ;;  %v622_v62 = vmul.f32 %v2361_v53, %v612_v57 }
 0x124   : > { %v2780_v63 = vpop.eup %2779  ;;  %v633_v1 = vadd.f32 %v2362_v56, %v623_v59  ;;  %v615_v3 = vmul.f32 %v2778_v60, %v603_v58 }
 0x125   : > { %v632_v4 = vadd.f32 %v2362_v56, %v622_v62  ;;  %v614_v5 = vmul.f32 %v2780_v63, %v602_v61 }
 0x126   : > { %v625_v6 = vmul.f32 %v2361_v53, %v615_v3 }
 0x127   : > { %v636_v7 = vpack.c.bf16 %v633_v1, %v632_v4  ;;  %v624_v8 = vmul.f32 %v2361_v53, %v614_v5 }
 0x128   : > { %v635_v9 = vadd.f32 %v2362_v56, %v625_v6 }
 0x129   : > { %2513 = vmatprep.mubr.msk.bf16.mxu0 %vm550_vm0, %v636_v7  ;;  %v634_v10 = vadd.f32 %v2362_v56, %v624_v8 }
 0x12b   : > { %v637_v11 = vpack.c.bf16 %v635_v9, %v634_v10 }
 0x12d   : > { %2514 = vmatmul.mubr.msk.bf16.vlgmr.msra.gmra.mxu0 %vm550_vm0, %v637_v11 }
 0x12e   : > { %2519 = vmatprep.mubr.msk.bf16.mxu0 %vm3081_vm1, %v3080_v2 }
 0x1ed   : > { %v2515_v0 = vpop.f32.mrf.mxu0 }
 0x1ee   : > { %v710_v15 = vadd.f32 %v2515_v0, %v2363_v12 }
 0x1ef   : > { %v701_v13 = vpop.f32.mrf.mxu0 }
 0x1f0   : > { %v702_v18 = vadd.f32 %v2363_v12, %v701_v13 }
 0x1f1   : > { %v2516_v14 = vpop.f32.mrf.mxu0 }
 0x1f2   : > { %v713_v16 = vadd.f32 %v2516_v14, %v2363_v12 }
 0x1f3   : > { %v704_v17 = vpop.f32.mrf.mxu0 }
 0x1f4   : > { %v3394_v19 = vpack.c.bf16 %v713_v16, %v710_v15  ;;  %v705_v20 = vadd.f32 %v2363_v12, %v704_v17 }
 0x1f6   : > { %v3396_v21 = vpack.c.bf16 %v705_v20, %v702_v18  ;;  %772 = vrot.lane.b32.xlu1 %v3394_v19, %s3082_s25 }
 0x1f8   : > { %721 = vrot.lane.b32.xlu0 %v3396_v21, %s3082_s25  ;;  %s3086_s25 = smov 88  }
 0x268   : > { %v773_v24 = vpop.permute.xlu1 %772 }
 0x269   : > { %v778_v25 = vsel %vm723_vm2, %v773_v24, 0 }
 0x26a   : > { %v722_v22 = vpop.permute.xlu0 %721 }
 0x26b   : > { %v728_v23 = vsel %vm723_vm2, %v722_v22, 0 }
 0x26c   : > { %2518 = vmatpush3.bf16.xpose.msra.mxu0 %v728_v23 }
 0x26d   : > { %2523 = vmatprep.subr.bf16.mxu0 %v3080_v2 }
 0x273   : > { %2520 = vmatmul.mubr.msk.bf16.vlgmr.msra.gmra.mxu0 %vm723_vm2, %v3396_v21 }
 0x274   : > { %2524 = vmatpush3.bf16.xpose.msra.mxu0 %v778_v25  ;;  %2525 = vmatprep.mubr.msk.bf16.mxu0 %vm3081_vm1, %v3080_v2 }
 0x275   : > { %2535 = vmatprep.subr.bf16.mxu0 %v3080_v2 }
 0x27b   : > { %2526 = vmatmul.mubr.msk.bf16.vlgmr.msra.gmra.mxu0 %vm723_vm2, %v3394_v19 }
 0x27c   : > { %2537 = vmatprep.mubr.msk.bf16.mxu0 %vm3081_vm1, %v3080_v2 }
 0x333   : > { %v764_v27 = vpop.f32.mrf.mxu0 }
 0x334   : > { %v765_v28 = vadd.f32 %v764_v27, %v718_v26 }
 0x335   : > { %v2521_v29 = vpop.f32.mrf.mxu0 }
 0x336   : > { %v822_v31 = vsel %vm821_vm3, %v765_v28, -inf }
 0x337   : > { %823 = vmax.xlane.f32.xlu1 %v822_v31  ;;  %v767_v32 = vpop.f32.mrf.mxu0  ;;  %v2376_v31 = vld [vmem:[%s3721_s5 + $0x10] sm:$0xff] }
 0x338   : > { %v768_v33 = vadd.f32 %v767_v32, %v719_v30 }
 0x339   : > { %v2522_v34 = vpop.f32.mrf.mxu0 }
 0x33a   : > { %v825_v35 = vsel %vm821_vm3, %v768_v33, -inf }
 0x33b   : > { %826 = vmax.xlane.f32.xlu0 %v825_v35  ;;  %v814_v36 = vpop.f32.mrf.mxu0  ;;  %v2377_v35 = vld [vmem:[%s3721_s5 + $0x18] sm:$0xff] }
 0x33c   : > { %v815_v37 = vadd.f32 %v814_v36, %v718_v26 }
 0x33d   : > { %v2527_v38 = vpop.f32.mrf.mxu0 }
 0x33e   : > { %v828_v39 = vsel %vm821_vm3, %v815_v37, -inf }
 0x33f   : > { %829 = vmax.xlane.f32.xlu0 %v828_v39  ;;  %v817_v40 = vpop.f32.mrf.mxu0 }
 0x340   : > { %v818_v41 = vadd.f32 %v817_v40, %v719_v30 }
 0x341   : > { %v2528_v42 = vpop.f32.mrf.mxu0 }
 0x342   : > { %v831_v43 = vsel %vm821_vm3, %v818_v41, -inf }
 0x343   : > { %832 = vmax.xlane.f32.xlu1 %v831_v43 }
 0x3c0   : > { %v824_v44 = vpop.xlane.xlu1 %823 }
 0x3c1   : > { %v834_v45 = vsub.f32 %v765_v28, %v824_v44 }
 0x3c3   : > { %v838_v46 = vmul.f32 1.442695, %v834_v45 }
 0x3c4   : > { %v827_v47 = vpop.xlane.xlu0 %826 }
 0x3c5   : > { %2781 = vpow2.f32 %v838_v46  ;;  %v835_v48 = vsub.f32 %v768_v33, %v827_v47 }
 0x3c7   : > { %v840_v49 = vmul.f32 1.442695, %v835_v48 }
 0x3c8   : > { %v830_v50 = vpop.xlane.xlu0 %829 }
 0x3c9   : > { %2783 = vpow2.f32 %v840_v49  ;;  %v836_v51 = vsub.f32 %v815_v37, %v830_v50 }
 0x3cb   : > { %v842_v52 = vmul.f32 1.442695, %v836_v51 }
 0x3cc   : > { %v833_v59 = vpop.xlane.xlu1 %832 }
 0x3cd   : > { %2785 = vpow2.f32 %v842_v52  ;;  %v837_v60 = vsub.f32 %v818_v41, %v833_v59 }
 0x3cf   : > { %v844_v61 = vmul.f32 1.442695, %v837_v60 }
 0x3d1   : > { %2787 = vpow2.f32 %v844_v61 }
 0x3d2   : > { %v2782_v53 = vpop.eup %2781 }
 0x3d3   : > { %v846_v54 = vsel %vm821_vm3, %v2782_v53, 0.0 }
 0x3d4   : > { %847 = vadd.xlane.f32.xlu0 %v846_v54 }
 0x3d6   : > { %v2784_v55 = vpop.eup %2783 }
 0x3d7   : > { %v849_v56 = vsel %vm821_vm3, %v2784_v55, 0.0 }
 0x3d8   : > { %850 = vadd.xlane.f32.xlu1 %v849_v56 }
 0x3da   : > { %v2786_v57 = vpop.eup %2785 }
 0x3db   : > { %v852_v58 = vsel %vm821_vm3, %v2786_v57, 0.0 }
 0x3dc   : > { %853 = vadd.xlane.f32.xlu0 %v852_v58 }
 0x3de   : > { %v2788_v62 = vpop.eup %2787 }
 0x3df   : > { %v855_v63 = vsel %vm821_vm3, %v2788_v62, 0.0 }
 0x3e9   : > { %915 = vrot.lane.b32.xlu1 %v3394_v19, %s3083_s21 }
 0x3ed   : > { %988 = vrot.lane.b32.xlu1 %v3396_v21, %s3084_s20 }
 0x3f2   : > { %868 = vrot.lane.b32.xlu0 %v3396_v21, %s3083_s21  ;;  %s3095_s21 = smov 24  }
 0x3f6   : > { %986 = vrot.lane.b32.xlu0 %v3396_v21, %s3085_s23 }
 0x411   : > { %856 = vadd.xlane.f32.xlu1 %v855_v63 }
 0x422   : > { %1039 = vrot.lane.b32.xlu1 %v3394_v19, %s3084_s20  ;;  %s2454_s20 = sshll.u32 %s3194_s17, 9  ;;  %s2218_s17 = scalar_lea.sflag [#allocation5], %s3315_s11 }
 0x426   : > { %1037 = vrot.lane.b32.xlu1 %v3394_v19, %s3085_s23  ;;  %s3089_s23 = smov 64  }
 0x45d   : > { %v848_v1 = vpop.xlane.xlu0 %847 }
 0x45e   : > { %2789 = vrcp.f32 %v848_v1 }
 0x461   : > { %v851_v3 = vpop.xlane.xlu1 %850 }
 0x462   : > { %2791 = vrcp.f32 %v851_v3 }
 0x465   : > { %v854_v4 = vpop.xlane.xlu0 %853  ;;  %v916_v5 = vpop.permute.xlu1 %915 }
 0x466   : > { %2536 = vmatpush3.bf16.msra.mxu0 %v916_v5  ;;  %2793 = vrcp.f32 %v854_v4 }
 0x467   : > { %2547 = vmatprep.subr.bf16.mxu0 %v3080_v2 }
 0x469   : > { %v869_v6 = vpop.permute.xlu0 %868  ;;  %v989_v11 = vpop.permute.xlu1 %988 }
 0x46a   : > { %2530 = vmatpush3.bf16.msra.mxu1 %v869_v6  ;;  %v994_v12 = vsel %vm723_vm2, %v989_v11, 0 }
 0x46b   : > { %2541 = vmatprep.subr.bf16.mxu1 %v3080_v2  ;;  %v2790_v7 = vpop.eup %2789 }
 0x46c   : > { %v862_v9 = vmul.f32 %v2790_v7, %v2782_v53 }
 0x46d   : > { %v987_v13 = vpop.permute.xlu0 %986 }
 0x46f   : > { %v2792_v8 = vpop.eup %2791 }
 0x470   : > { %v863_v10 = vmul.f32 %v2792_v8, %v2784_v55 }
 0x472   : > { %v866_v0 = vpack.c.bf16 %v863_v10, %v862_v9 }
 0x473   : > { %v2794_v15 = vpop.eup %2793 }
 0x474   : > { %2532 = vmatmul.mubr.msk.bf16.vlgmr.msra.gmra.mxu1 %vm821_vm3, %v866_v0  ;;  %v864_v17 = vmul.f32 %v2794_v15, %v2786_v57 }
 0x475   : > { %2542 = vmatpush3.bf16.xpose.msra.mxu1 %v994_v12  ;;  %2543 = vmatprep.mubr.msk.bf16.mxu1 %vm3081_vm1, %v3080_v2 }
 0x476   : > { %2553 = vmatprep.subr.bf16.mxu1 %v3080_v2 }
 0x47c   : > { %2544 = vmatmul.mubr.msk.bf16.vlgmr.msra.gmra.mxu1 %vm723_vm2, %v987_v13 }
 0x47d   : > { %2555 = vmatprep.mubr.msk.bf16.mxu1 %vm3081_vm1, %v3080_v2 }
 0x49a   : > { %v857_v14 = vpop.xlane.xlu1 %856 }
 0x49b   : > { %2795 = vrcp.f32 %v857_v14 }
 0x49e   : > { %v1040_v20 = vpop.permute.xlu1 %1039 }
 0x49f   : > { %v1045_v23 = vsel %vm723_vm2, %v1040_v20, 0 }
 0x4a2   : > { %v1038_v24 = vpop.permute.xlu1 %1037 }
 0x4a8   : > { %v2796_v16 = vpop.eup %2795 }
 0x4a9   : > { %v865_v18 = vmul.f32 %v2796_v16, %v2788_v62 }
 0x4ab   : > { %v867_v22 = vpack.c.bf16 %v865_v18, %v864_v17 }
 0x4ad   : > { %2538 = vmatmul.mubr.msk.bf16.vlgmr.msra.gmra.mxu0 %vm821_vm3, %v867_v22 }
 0x4ae   : > { %2548 = vmatpush3.bf16.xpose.msra.mxu0 %v1045_v23  ;;  %2549 = vmatprep.mubr.msk.bf16.mxu0 %vm3081_vm1, %v3080_v2 }
 0x4af   : > { %2559 = vmatprep.subr.bf16.mxu0 %v3080_v2 }
 0x4b5   : > { %2550 = vmatmul.mubr.msk.bf16.vlgmr.msra.gmra.mxu0 %vm723_vm2, %v1038_v24 }
 0x4b6   : > { %2561 = vmatprep.mubr.msk.bf16.mxu0 %vm3081_vm1, %v3080_v2 }
 0x534   : > { %v908_v25 = vpop.f32.mrf.mxu1 }
 0x535   : > { %v2437_v26 = vpack.c.bf16 %v908_v25, %v908_v25 }
 0x536   : > { %v2533_v27 = vpop.f32.mrf.mxu1 }
 0x537   : > { %979 = vst.msk [vmem:[#allocation2] sm:$0xf] %vm978_vm4, %v2437_v26 }
 0x538   : > { %v911_v28 = vpop.f32.mrf.mxu1 }
 0x539   : > { %v2438_v29 = vpack.c.bf16 %v911_v28, %v911_v28 }
 0x53a   : > { %v2534_v30 = vpop.f32.mrf.mxu1 }
 0x53b   : > { %980 = vst.msk [vmem:[#allocation2 + $0x4] sm:$0xf] %vm978_vm4, %v2438_v29 }
 0x53c   : > { %v1030_v32 = vpop.f32.mrf.mxu1 }
 0x53d   : > { %v1031_v33 = vadd.f32 %v2376_v31, %v1030_v32 }
 0x53e   : > { %v2545_v34 = vpop.f32.mrf.mxu1 }
 0x53f   : > { %v1088_v36 = vsel %vm821_vm3, %v1031_v33, -inf }
 0x540   : > { %1089 = vmax.xlane.f32.xlu0 %v1088_v36  ;;  %v1033_v37 = vpop.f32.mrf.mxu1 }
 0x541   : > { %v1034_v38 = vadd.f32 %v2377_v35, %v1033_v37 }
 0x542   : > { %v2546_v39 = vpop.f32.mrf.mxu1 }
 0x543   : > { %v1091_v40 = vsel %vm821_vm3, %v1034_v38, -inf }
 0x544   : > { %1092 = vmax.xlane.f32.xlu1 %v1091_v40  ;;  %v2386_v40 = vld [vmem:[%s3721_s5 + $0x20] sm:$0xff] }
 0x56d   : > { %v955_v41 = vpop.f32.mrf.mxu0 }
 0x56e   : > { %v2439_v42 = vpack.c.bf16 %v955_v41, %v955_v41 }
 0x56f   : > { %v2539_v43 = vpop.f32.mrf.mxu0 }
 0x570   : > { %981 = vst.msk [vmem:[#allocation2 + $0x8] sm:$0xf] %vm978_vm4, %v2439_v42 }
 0x571   : > { %v958_v44 = vpop.f32.mrf.mxu0 }
 0x572   : > { %v2440_v45 = vpack.c.bf16 %v958_v44, %v958_v44  ;;  %v2387_v44 = vld [vmem:[%s3721_s5 + $0x28] sm:$0xff] }
 0x573   : > { %v2540_v46 = vpop.f32.mrf.mxu0 }
 0x574   : > { %982 = vst.msk [vmem:[#allocation2 + $0xc] sm:$0xf] %vm978_vm4, %v2440_v45 }
 0x575   : > { %v1081_v47 = vpop.f32.mrf.mxu0 }
 0x576   : > { %v1082_v48 = vadd.f32 %v2376_v31, %v1081_v47 }
 0x577   : > { %v2551_v49 = vpop.f32.mrf.mxu0 }
 0x578   : > { %v1094_v50 = vsel %vm821_vm3, %v1082_v48, -inf }
 0x579   : > { %1095 = vmax.xlane.f32.xlu0 %v1094_v50  ;;  %v1084_v51 = vpop.f32.mrf.mxu0 }
 0x57a   : > { %v1085_v52 = vadd.f32 %v2377_v35, %v1084_v51 }
 0x57b   : > { %v2552_v53 = vpop.f32.mrf.mxu0 }
 0x57c   : > { %v1097_v54 = vsel %vm821_vm3, %v1085_v52, -inf }
 0x57d   : > { %1098 = vmax.xlane.f32.xlu0 %v1097_v54 }
 0x5c9   : > { %v1090_v55 = vpop.xlane.xlu0 %1089 }
 0x5ca   : > { %v1100_v56 = vsub.f32 %v1031_v33, %v1090_v55 }
 0x5cc   : > { %v1104_v57 = vmul.f32 1.442695, %v1100_v56 }
 0x5cd   : > { %v1093_v58 = vpop.xlane.xlu1 %1092 }
 0x5ce   : > { %2797 = vpow2.f32 %v1104_v57  ;;  %v1101_v59 = vsub.f32 %v1034_v38, %v1093_v58 }
 0x5d0   : > { %v1106_v60 = vmul.f32 1.442695, %v1101_v59 }
 0x5d2   : > { %2799 = vpow2.f32 %v1106_v60 }
 0x5db   : > { %v2798_v61 = vpop.eup %2797 }
 0x5dc   : > { %v1112_v62 = vsel %vm821_vm3, %v2798_v61, 0.0 }
 0x5dd   : > { %1113 = vadd.xlane.f32.xlu0 %v1112_v62 }
 0x5df   : > { %v2800_v63 = vpop.eup %2799 }
 0x5e0   : > { %v1115_v1 = vsel %vm821_vm3, %v2800_v63, 0.0 }
 0x5e1   : > { %1116 = vadd.xlane.f32.xlu1 %v1115_v1 }
 0x5f2   : > { %1181 = vrot.lane.b32.xlu1 %v3394_v19, %s3086_s25 }
 0x5f6   : > { %1262 = vrot.lane.b32.xlu1 %v3396_v21, %s3087_s22 }
 0x602   : > { %v1096_v3 = vpop.xlane.xlu0 %1095 }
 0x603   : > { %v1102_v4 = vsub.f32 %v1082_v48, %v1096_v3 }
 0x605   : > { %v1108_v5 = vmul.f32 1.442695, %v1102_v4 }
 0x606   : > { %v1099_v6 = vpop.xlane.xlu0 %1098 }
 0x607   : > { %2801 = vpow2.f32 %v1108_v5  ;;  %v1103_v7 = vsub.f32 %v1085_v52, %v1099_v6 }
 0x609   : > { %v1110_v8 = vmul.f32 1.442695, %v1103_v7 }
 0x60b   : > { %2803 = vpow2.f32 %v1110_v8 }
 0x614   : > { %v2802_v9 = vpop.eup %2801 }
 0x615   : > { %v1118_v10 = vsel %vm821_vm3, %v2802_v9, 0.0 }
 0x616   : > { %1119 = vadd.xlane.f32.xlu0 %v1118_v10 }
 0x618   : > { %v2804_v11 = vpop.eup %2803 }
 0x619   : > { %v1121_v0 = vsel %vm821_vm3, %v2804_v11, 0.0 }
 0x61a   : > { %1122 = vadd.xlane.f32.xlu1 %v1121_v0 }
 0x62b   : > { %1313 = vrot.lane.b32.xlu1 %v3394_v19, %s3087_s22 }
 0x62c   : > { %1134 = vrot.lane.b32.xlu0 %v3396_v21, %s3086_s25  ;;  %s3003_s25 = scalar_lea.vmem %s3002_s10, 1024 }
 0x62f   : > { %1311 = vrot.lane.b32.xlu1 %v3394_v19, %s3088_s6 }
 0x630   : > { %1260 = vrot.lane.b32.xlu0 %v3396_v21, %s3088_s6  ;;  %s3092_s6 = smov 40  }
 0x666   : > { %v1114_v14 = vpop.xlane.xlu0 %1113 }
 0x66a   : > { %v1117_v12 = vpop.xlane.xlu1 %1116 }
 0x66b   : > { %2805 = vrcp.f32 %v1117_v12 }
 0x66c   : > { %2807 = vrcp.f32 %v1114_v14 }
 0x66e   : > { %v1182_v13 = vpop.permute.xlu1 %1181 }
 0x66f   : > { %2560 = vmatpush3.bf16.msra.mxu0 %v1182_v13 }
 0x670   : > { %2571 = vmatprep.subr.bf16.mxu0 %v3080_v2 }
 0x672   : > { %v1263_v16 = vpop.permute.xlu1 %1262 }
 0x673   : > { %v1268_v26 = vsel %vm723_vm2, %v1263_v16, 0 }
 0x678   : > { %v2806_v15 = vpop.eup %2805 }
 0x679   : > { %v2808_v18 = vpop.eup %2807  ;;  %v1129_v20 = vmul.f32 %v2806_v15, %v2800_v63 }
 0x67a   : > { %v1128_v24 = vmul.f32 %v2808_v18, %v2798_v61 }
 0x67c   : > { %v1132_v25 = vpack.c.bf16 %v1129_v20, %v1128_v24 }
 0x69f   : > { %v1120_v17 = vpop.xlane.xlu0 %1119 }
 0x6a0   : > { %2809 = vrcp.f32 %v1120_v17 }
 0x6a3   : > { %v1123_v22 = vpop.xlane.xlu1 %1122  ;;  %v1135_v23 = vpop.permute.xlu0 %1134 }
 0x6a4   : > { %2811 = vrcp.f32 %v1123_v22  ;;  %2554 = vmatpush3.bf16.msra.mxu1 %v1135_v23 }
 0x6a5   : > { %2565 = vmatprep.subr.bf16.mxu1 %v3080_v2 }
 0x6a7   : > { %2556 = vmatmul.mubr.msk.bf16.vlgmr.msra.gmra.mxu1 %vm821_vm3, %v1132_v25  ;;  %v1261_v27 = vpop.permute.xlu0 %1260  ;;  %v1314_v32 = vpop.permute.xlu1 %1313 }
 0x6a8   : > { %2566 = vmatpush3.bf16.xpose.msra.mxu1 %v1268_v26  ;;  %2567 = vmatprep.mubr.msk.bf16.mxu1 %vm3081_vm1, %v3080_v2  ;;  %v1319_v34 = vsel %vm723_vm2, %v1314_v32, 0 }
 0x6a9   : > { %2577 = vmatprep.subr.bf16.mxu1 %v3080_v2 }
 0x6ab   : > { %v1312_v35 = vpop.permute.xlu1 %1311 }
 0x6ad   : > { %v2810_v28 = vpop.eup %2809 }
 0x6ae   : > { %v1130_v30 = vmul.f32 %v2810_v28, %v2802_v9 }
 0x6af   : > { %2568 = vmatmul.mubr.msk.bf16.vlgmr.msra.gmra.mxu1 %vm723_vm2, %v1261_v27 }
 0x6b0   : > { %2579 = vmatprep.mubr.msk.bf16.mxu1 %vm3081_vm1, %v3080_v2 }
 0x6b1   : > { %v2812_v29 = vpop.eup %2811 }
 0x6b2   : > { %v1131_v31 = vmul.f32 %v2812_v29, %v2804_v11 }
 0x6b4   : > { %v1133_v33 = vpack.c.bf16 %v1131_v31, %v1130_v30 }
 0x6b6   : > { %2562 = vmatmul.mubr.msk.bf16.vlgmr.msra.gmra.mxu0 %vm821_vm3, %v1133_v33 }
 0x6b7   : > { %2572 = vmatpush3.bf16.xpose.msra.mxu0 %v1319_v34  ;;  %2573 = vmatprep.mubr.msk.bf16.mxu0 %vm3081_vm1, %v3080_v2 }
 0x6b8   : > { %2583 = vmatprep.subr.bf16.mxu0 %v3080_v2 }
 0x6be   : > { %2574 = vmatmul.mubr.msk.bf16.vlgmr.msra.gmra.mxu0 %vm723_vm2, %v1312_v35 }
 0x6bf   : > { %2585 = vmatprep.mubr.msk.bf16.mxu0 %vm3081_vm1, %v3080_v2 }
 0x767   : > { %v3492_v36 = vpop.f32.mrf.mxu1 }
 0x769   : > { %v2557_v37 = vpop.f32.mrf.mxu1 }
 0x76b   : > { %v3494_v38 = vpop.f32.mrf.mxu1 }
 0x76d   : > { %v2558_v39 = vpop.f32.mrf.mxu1 }
 0x76f   : > { %v1304_v41 = vpop.f32.mrf.mxu1 }
 0x770   : > { %v1305_v42 = vadd.f32 %v2386_v40, %v1304_v41 }
 0x771   : > { %v2569_v43 = vpop.f32.mrf.mxu1 }
 0x772   : > { %v1362_v45 = vsel %vm821_vm3, %v1305_v42, -inf }
 0x773   : > { %1363 = vmax.xlane.f32.xlu0 %v1362_v45  ;;  %v1307_v46 = vpop.f32.mrf.mxu1 }
 0x774   : > { %v1308_v47 = vadd.f32 %v2387_v44, %v1307_v46 }
 0x775   : > { %v2570_v48 = vpop.f32.mrf.mxu1 }
 0x776   : > { %v3503_v49 = vpop.f32.mrf.mxu0  ;;  %v1365_v50 = vsel %vm821_vm3, %v1308_v47, -inf }
 0x777   : > { %1366 = vmax.xlane.f32.xlu1 %v1365_v50  ;;  %v2396_v50 = vld [vmem:[%s3721_s5 + $0x30] sm:$0xff] }
 0x778   : > { %v2563_v51 = vpop.f32.mrf.mxu0 }
 0x77a   : > { %v3506_v52 = vpop.f32.mrf.mxu0 }
 0x77c   : > { %v2564_v53 = vpop.f32.mrf.mxu0 }
 0x77e   : > { %v1355_v54 = vpop.f32.mrf.mxu0 }
 0x77f   : > { %v1356_v55 = vadd.f32 %v2386_v40, %v1355_v54 }
 0x780   : > { %v2575_v56 = vpop.f32.mrf.mxu0 }
 0x781   : > { %v1368_v57 = vsel %vm821_vm3, %v1356_v55, -inf }
 0x782   : > { %1369 = vmax.xlane.f32.xlu0 %v1368_v57  ;;  %v1358_v58 = vpop.f32.mrf.mxu0 }
 0x783   : > { %v1359_v59 = vadd.f32 %v2387_v44, %v1358_v58 }
 0x784   : > { %v2576_v60 = vpop.f32.mrf.mxu0 }
 0x785   : > { %v1371_v61 = vsel %vm821_vm3, %v1359_v59, -inf }
 0x786   : > { %1372 = vmax.xlane.f32.xlu0 %v1371_v61 }
 0x7fc   : > { %v1364_v62 = vpop.xlane.xlu0 %1363 }
 0x7fd   : > { %v1374_v63 = vsub.f32 %v1305_v42, %v1364_v62 }
 0x7ff   : > { %v1378_v1 = vmul.f32 1.442695, %v1374_v63 }
 0x800   : > { %v1367_v3 = vpop.xlane.xlu1 %1366 }
 0x801   : > { %2813 = vpow2.f32 %v1378_v1  ;;  %v1375_v4 = vsub.f32 %v1308_v47, %v1367_v3 }
 0x803   : > { %v1380_v5 = vmul.f32 1.442695, %v1375_v4 }
 0x805   : > { %2815 = vpow2.f32 %v1380_v5 }
 0x80b   : > { %v1370_v6 = vpop.xlane.xlu0 %1369 }
 0x80c   : > { %v1376_v7 = vsub.f32 %v1356_v55, %v1370_v6  ;;  %v2397_v55 = vld [vmem:[%s3721_s5 + $0x38] sm:$0xff] }
 0x80e   : > { %v2814_v8 = vpop.eup %2813  ;;  %v1382_v9 = vmul.f32 1.442695, %v1376_v7 }
 0x80f   : > { %v1386_v10 = vsel %vm821_vm3, %v2814_v8, 0.0  ;;  %v1373_v14 = vpop.xlane.xlu0 %1372 }
 0x810   : > { %2817 = vpow2.f32 %v1382_v9  ;;  %1387 = vadd.xlane.f32.xlu0 %v1386_v10  ;;  %v1377_v15 = vsub.f32 %v1359_v59, %v1373_v14 }
 0x812   : > { %v2816_v11 = vpop.eup %2815  ;;  %v1384_v16 = vmul.f32 1.442695, %v1377_v15 }
 0x813   : > { %v1389_v0 = vsel %vm821_vm3, %v2816_v11, 0.0 }
 0x814   : > { %1390 = vadd.xlane.f32.xlu1 %v1389_v0  ;;  %2819 = vpow2.f32 %v1384_v16 }
 0x81d   : > { %v2818_v12 = vpop.eup %2817 }
 0x81e   : > { %v1392_v13 = vsel %vm821_vm3, %v2818_v12, 0.0 }
 0x81f   : > { %1393 = vadd.xlane.f32.xlu0 %v1392_v13 }
 0x821   : > { %v2820_v17 = vpop.eup %2819 }
 0x822   : > { %v1395_v18 = vsel %vm821_vm3, %v2820_v17, 0.0 }
 0x825   : > { %1455 = vrot.lane.b32.xlu1 %v3394_v19, %s3089_s23 }
 0x829   : > { %1536 = vrot.lane.b32.xlu1 %v3396_v21, %s3090_s24 }
 0x835   : > { %1408 = vrot.lane.b32.xlu0 %v3396_v21, %s3089_s23 }
 0x839   : > { %1534 = vrot.lane.b32.xlu0 %v3396_v21, %s3091_s14 }
 0x84d   : > { %1396 = vadd.xlane.f32.xlu1 %v1395_v18 }
 0x85e   : > { %1587 = vrot.lane.b32.xlu1 %v3394_v19, %s3090_s24 }
 0x862   : > { %1585 = vrot.lane.b32.xlu1 %v3394_v19, %s3091_s14 }
 0x899   : > { %v1388_v20 = vpop.xlane.xlu0 %1387 }
 0x89a   : > { %2821 = vrcp.f32 %v1388_v20 }
 0x89d   : > { %v1391_v22 = vpop.xlane.xlu1 %1390 }
 0x89e   : > { %2823 = vrcp.f32 %v1391_v22 }
 0x8a1   : > { %v1456_v23 = vpop.permute.xlu1 %1455 }
 0x8a2   : > { %2584 = vmatpush3.bf16.msra.mxu0 %v1456_v23 }
 0x8a3   : > { %2595 = vmatprep.subr.bf16.mxu0 %v3080_v2 }
 0x8a5   : > { %v1537_v30 = vpop.permute.xlu1 %1536 }
 0x8a6   : > { %v1542_v32 = vsel %vm723_vm2, %v1537_v30, 0 }
 0x8a7   : > { %v2822_v25 = vpop.eup %2821 }
 0x8a8   : > { %v1394_v24 = vpop.xlane.xlu0 %1393  ;;  %v1402_v28 = vmul.f32 %v2822_v25, %v2814_v8 }
 0x8a9   : > { %2825 = vrcp.f32 %v1394_v24 }
 0x8ab   : > { %v2824_v26 = vpop.eup %2823 }
 0x8ac   : > { %v1409_v27 = vpop.permute.xlu0 %1408  ;;  %v1403_v29 = vmul.f32 %v2824_v26, %v2816_v11 }
 0x8ad   : > { %2578 = vmatpush3.bf16.msra.mxu1 %v1409_v27 }
 0x8ae   : > { %v1406_v31 = vpack.c.bf16 %v1403_v29, %v1402_v28  ;;  %2589 = vmatprep.subr.bf16.mxu1 %v3080_v2 }
 0x8b0   : > { %2580 = vmatmul.mubr.msk.bf16.vlgmr.msra.gmra.mxu1 %vm821_vm3, %v1406_v31  ;;  %v1535_v33 = vpop.permute.xlu0 %1534  ;;  %v2441_v31 = vpack.c.bf16 %v3492_v36, %v3492_v36 }
 0x8b1   : > { %2590 = vmatpush3.bf16.xpose.msra.mxu1 %v1542_v32  ;;  %2591 = vmatprep.mubr.msk.bf16.mxu1 %vm3081_vm1, %v3080_v2  ;;  %v2443_v32 = vpack.c.bf16 %v3503_v49, %v3503_v49 }
 0x8b2   : > { %2601 = vmatprep.subr.bf16.mxu1 %v3080_v2 }
 0x8b6   : > { %v2826_v35 = vpop.eup %2825 }
 0x8b7   : > { %v1404_v39 = vmul.f32 %v2826_v35, %v2818_v12 }
 0x8b8   : > { %2592 = vmatmul.mubr.msk.bf16.vlgmr.msra.gmra.mxu1 %vm723_vm2, %v1535_v33  ;;  %v2442_v33 = vpack.c.bf16 %v3494_v38, %v3494_v38 }
 0x8b9   : > { %2603 = vmatprep.mubr.msk.bf16.mxu1 %vm3081_vm1, %v3080_v2 }
 0x8d6   : > { %v1397_v34 = vpop.xlane.xlu1 %1396 }
 0x8d7   : > { %2827 = vrcp.f32 %v1397_v34 }
 0x8da   : > { %v1588_v41 = vpop.permute.xlu1 %1587 }
 0x8db   : > { %v1593_v43 = vsel %vm723_vm2, %v1588_v41, 0 }
 0x8de   : > { %v1586_v44 = vpop.permute.xlu1 %1585 }
 0x8e4   : > { %v2828_v37 = vpop.eup %2827 }
 0x8e5   : > { %v1405_v40 = vmul.f32 %v2828_v37, %v2820_v17 }
 0x8e7   : > { %v1407_v42 = vpack.c.bf16 %v1405_v40, %v1404_v39 }
 0x8e9   : > { %2586 = vmatmul.mubr.msk.bf16.vlgmr.msra.gmra.mxu0 %vm821_vm3, %v1407_v42 }
 0x8ea   : > { %2596 = vmatpush3.bf16.xpose.msra.mxu0 %v1593_v43  ;;  %2597 = vmatprep.mubr.msk.bf16.mxu0 %vm3081_vm1, %v3080_v2 }
 0x8eb   : > { %2607 = vmatprep.subr.bf16.mxu0 %v3080_v2 }
 0x8f1   : > { %2598 = vmatmul.mubr.msk.bf16.vlgmr.msra.gmra.mxu0 %vm723_vm2, %v1586_v44 }
 0x8f2   : > { %2609 = vmatprep.mubr.msk.bf16.mxu0 %vm3081_vm1, %v3080_v2 }
 0x970   : > { %v3538_v45 = vpop.f32.mrf.mxu1 }
 0x971   : > { %v2445_v34 = vpack.c.bf16 %v3538_v45, %v3538_v45 }
 0x972   : > { %v2581_v46 = vpop.f32.mrf.mxu1 }
 0x974   : > { %v3540_v47 = vpop.f32.mrf.mxu1 }
 0x975   : > { %v2446_v36 = vpack.c.bf16 %v3540_v47, %v3540_v47 }
 0x976   : > { %v2582_v48 = vpop.f32.mrf.mxu1 }
 0x978   : > { %v1578_v51 = vpop.f32.mrf.mxu1 }
 0x979   : > { %v1579_v53 = vadd.f32 %v2396_v50, %v1578_v51 }
 0x97a   : > { %v2593_v54 = vpop.f32.mrf.mxu1 }
 0x97b   : > { %v1636_v56 = vsel %vm821_vm3, %v1579_v53, -inf }
 0x97c   : > { %1637 = vmax.xlane.f32.xlu0 %v1636_v56  ;;  %v1581_v2 = vpop.f32.mrf.mxu1 }
 0x97d   : > { %v1582_v57 = vadd.f32 %v2397_v55, %v1581_v2 }
 0x97e   : > { %v2594_v58 = vpop.f32.mrf.mxu1 }
 0x97f   : > { %v1639_v59 = vsel %vm821_vm3, %v1582_v57, -inf }
 0x980   : > { %1640 = vmax.xlane.f32.xlu1 %v1639_v59 }
 0x9a9   : > { %v1495_v60 = vpop.f32.mrf.mxu0 }
 0x9ab   : > { %v2587_v61 = vpop.f32.mrf.mxu0 }
 0x9ad   : > { %v1498_v62 = vpop.f32.mrf.mxu0 }
 0x9ae   : > { %v2448_v49 = vpack.c.bf16 %v1498_v62, %v1498_v62 }
 0x9af   : > { %v2588_v63 = vpop.f32.mrf.mxu0 }
 0x9b1   : > { %v1629_v1 = vpop.f32.mrf.mxu0 }
 0x9b2   : > { %v1630_v3 = vadd.f32 %v2396_v50, %v1629_v1 }
 0x9b3   : > { %v2599_v4 = vpop.f32.mrf.mxu0 }
 0x9b4   : > { %v1642_v5 = vsel %vm821_vm3, %v1630_v3, -inf  ;;  %v2760_v4 = vld [vmem:[#allocation6 + $0x8] sm:$0xff]  }
 0x9b5   : > { %1643 = vmax.xlane.f32.xlu0 %v1642_v5  ;;  %v1632_v6 = vpop.f32.mrf.mxu0  ;;  %v2761_v5 = vld [vmem:[#allocation6] sm:$0xff]  }
 0x9b6   : > { %v1633_v7 = vadd.f32 %v2397_v55, %v1632_v6 }
 0x9b7   : > { %v2600_v8 = vpop.f32.mrf.mxu0 }
 0x9b8   : > { %v1645_v9 = vsel %vm821_vm3, %v1633_v7, -inf }
 0x9b9   : > { %1646 = vmax.xlane.f32.xlu0 %v1645_v9 }
 0xa05   : > { %v1638_v10 = vpop.xlane.xlu0 %1637 }
 0xa06   : > { %v1648_v11 = vsub.f32 %v1579_v53, %v1638_v10 }
 0xa08   : > { %v1652_v0 = vmul.f32 1.442695, %v1648_v11 }
 0xa09   : > { %v1641_v12 = vpop.xlane.xlu1 %1640 }
 0xa0a   : > { %2829 = vpow2.f32 %v1652_v0  ;;  %v1649_v13 = vsub.f32 %v1582_v57, %v1641_v12 }
 0xa0c   : > { %v1654_v14 = vmul.f32 1.442695, %v1649_v13 }
 0xa0e   : > { %2831 = vpow2.f32 %v1654_v14 }
 0xa17   : > { %v2830_v15 = vpop.eup %2829 }
 0xa18   : > { %v1660_v16 = vsel %vm821_vm3, %v2830_v15, 0.0 }
 0xa19   : > { %1661 = vadd.xlane.f32.xlu0 %v1660_v16 }
 0xa1b   : > { %v2832_v17 = vpop.eup %2831 }
 0xa1c   : > { %v1663_v18 = vsel %vm821_vm3, %v2832_v17, 0.0 }
 0xa1d   : > { %1664 = vadd.xlane.f32.xlu1 %v1663_v18 }
 0xa3e   : > { %v1644_v20 = vpop.xlane.xlu0 %1643 }
 0xa3f   : > { %v1650_v22 = vsub.f32 %v1630_v3, %v1644_v20 }
 0xa41   : > { %v1656_v23 = vmul.f32 1.442695, %v1650_v22 }
 0xa42   : > { %v1647_v24 = vpop.xlane.xlu0 %1646 }
 0xa43   : > { %2833 = vpow2.f32 %v1656_v23  ;;  %v1651_v25 = vsub.f32 %v1633_v7, %v1647_v24  ;;  %v2861_v23 = vld [vmem:[%s3321_s18 + $0x10] sm:$0xff] }
 0xa45   : > { %v1658_v26 = vmul.f32 1.442695, %v1651_v25 }
 0xa47   : > { %2835 = vpow2.f32 %v1658_v26 }
 0xa50   : > { %v2834_v27 = vpop.eup %2833 }
 0xa51   : > { %v1666_v28 = vsel %vm821_vm3, %v2834_v27, 0.0 }
 0xa52   : > { %1667 = vadd.xlane.f32.xlu0 %v1666_v28 }
 0xa54   : > { %v2836_v29 = vpop.eup %2835 }
 0xa55   : > { %v1669_v30 = vsel %vm821_vm3, %v2836_v29, 0.0 }
 0xa56   : > { %1670 = vadd.xlane.f32.xlu1 %v1669_v30 }
 0xa67   : > { %1729 = vrot.lane.b32.xlu1 %v3394_v19, %s3092_s6  ;;  %v2444_v19 = vpack.c.bf16 %v3506_v52, %v3506_v52 }
 0xa68   : > { %1682 = vrot.lane.b32.xlu0 %v3396_v21, %s3092_s6  ;;  %v2447_v21 = vpack.c.bf16 %v1495_v60, %v1495_v60 }
 0xa6b   : > { %1240 = vrot.lane.b32.xlu1 %v2441_v31, %s3093_s9 }
 0xa6c   : > { %1244 = vrot.lane.b32.xlu0 %v2443_v32, %s3093_s9 }
 0xa6f   : > { %1242 = vrot.lane.b32.xlu1 %v2442_v33, %s3093_s9  ;;  %v2863_v33 = vld [vmem:[%s3321_s18 + $0x18] sm:$0xff] }
 0xa70   : > { %1514 = vrot.lane.b32.xlu0 %v2445_v34, %s3094_s19 }
 0xa73   : > { %1246 = vrot.lane.b32.xlu1 %v2444_v19, %s3093_s9  ;;  %v2864_v19 = vld [vmem:[%s3321_s18 + $0x8] sm:$0xff] }
 0xa74   : > { %1518 = vrot.lane.b32.xlu0 %v2447_v21, %s3094_s19 }
 0xa77   : > { %1516 = vrot.lane.b32.xlu1 %v2446_v36, %s3094_s19 }
 0xa7b   : > { %1520 = vrot.lane.b32.xlu1 %v2448_v49, %s3094_s19  ;;  %s540_s19 = scalar_lea.vmem [#allocation12], %s2355_s27 }
 0xaa2   : > { %v1662_v35 = vpop.xlane.xlu0 %1661 }
 0xaa6   : > { %v1665_v38 = vpop.xlane.xlu1 %1664 }
 0xaa7   : > { %2837 = vrcp.f32 %v1665_v38 }
 0xaa8   : > { %2839 = vrcp.f32 %v1662_v35 }
 0xab4   : > { %v2838_v37 = vpop.eup %2837 }
 0xab5   : > { %v2840_v40 = vpop.eup %2839  ;;  %v1677_v41 = vmul.f32 %v2838_v37, %v2832_v17  ;;  %v2406_v17 = vld [vmem:[%s3723_s7] ss:$0 sm:$0xff] }
 0xab6   : > { %v1676_v43 = vmul.f32 %v2840_v40, %v2830_v15 }
 0xab8   : > { %v1680_v44 = vpack.c.bf16 %v1677_v41, %v1676_v43 }
 0xadb   : > { %v1668_v39 = vpop.xlane.xlu0 %1667 }
 0xadc   : > { %2841 = vrcp.f32 %v1668_v39 }
 0xadf   : > { %v1671_v52 = vpop.xlane.xlu1 %1670  ;;  %v1683_v42 = vpop.permute.xlu0 %1682 }
 0xae0   : > { %2843 = vrcp.f32 %v1671_v52  ;;  %2602 = vmatpush3.bf16.msra.mxu1 %v1683_v42 }
 0xae1   : > { %2613 = vmatprep.subr.bf16.mxu1 %v2760_v4 }
 0xae3   : > { %v1730_v45 = vpop.permute.xlu1 %1729  ;;  %2604 = vmatmul.mubr.msk.bf16.vlgmr.msra.gmra.mxu1 %vm821_vm3, %v1680_v44  ;;  %v1245_v46 = vpop.permute.xlu0 %1244  ;;  %v2763_v44 = vld [vmem:[#allocation9 + $0x8] sm:$0xff]  }
 0xae4   : > { %1255 = vst.msk [vmem:[#allocation2 + $0x8] sm:$0xf] %vm1252_vm5, %v1245_v46  ;;  %2608 = vmatpush3.bf16.msra.mxu0 %v1730_v45  ;;  %2614 = vmatpush3.bf16.msra.mxu1 %v2760_v4  ;;  %v2764_v45 = vld [vmem:[#allocation9] sm:$0xff]  }
 0xae5   : > { %2615 = vmatprep.subr.bf16.mxu1 %v2761_v5  ;;  %2621 = vmatprep.subr.bf16.mxu0 %v2763_v44 }
 0xae7   : > { %v1241_v47 = vpop.permute.xlu1 %1240  ;;  %v1515_v48 = vpop.permute.xlu0 %1514 }
 0xae8   : > { %1253 = vst.msk [vmem:[#allocation2] sm:$0xf] %vm1252_vm5, %v1241_v47  ;;  %2616 = vmatpush3.bf16.msra.mxu1 %v2761_v5 }
 0xae9   : > { %1527 = vst.msk [vmem:[#allocation2] sm:$0xf] %vm1526_vm6, %v1515_v48  ;;  %v2842_v50 = vpop.eup %2841 }
 0xaea   : > { %v1678_v55 = vmul.f32 %v2842_v50, %v2834_v27  ;;  %v2862_v27 = vld [vmem:[%s3321_s18] sm:$0xff]  ;;  %s3763_s18 = sld [smem:[#allocation24_spill]] }
 0xaeb   : > { %v1243_v51 = vpop.permute.xlu1 %1242  ;;  %v1519_v53 = vpop.permute.xlu0 %1518 }
 0xaec   : > { %1254 = vst.msk [vmem:[#allocation2 + $0x4] sm:$0xf] %vm1252_vm5, %v1243_v51 }
 0xaed   : > { %1529 = vst.msk [vmem:[#allocation2 + $0x8] sm:$0xf] %vm1526_vm6, %v1519_v53  ;;  %v2844_v54 = vpop.eup %2843 }
 0xaee   : > { %v1679_v56 = vmul.f32 %v2844_v54, %v2836_v29 }
 0xaef   : > { %v1247_v2 = vpop.permute.xlu1 %1246 }
 0xaf0   : > { %1256 = vst.msk [vmem:[#allocation2 + $0xc] sm:$0xf] %vm1252_vm5, %v1247_v2  ;;  %v1681_v57 = vpack.c.bf16 %v1679_v56, %v1678_v55  ;;  %s3672_s24 = scalar_lea.hbm %s3763_s18, %s2454_s20 }
 0xaf2   : > { %2610 = vmatmul.mubr.msk.bf16.vlgmr.msra.gmra.mxu0 %vm821_vm3, %v1681_v57 }
 0xaf3   : > { %v1517_v58 = vpop.permute.xlu1 %1516  ;;  %2622 = vmatpush3.bf16.msra.mxu0 %v2763_v44  ;;  %v2767_v44 = vld [vmem:[%s3728_s12 + $0x28] sm:$0xff]  }
 0xaf4   : > { %1528 = vst.msk [vmem:[#allocation2 + $0x4] sm:$0xf] %vm1526_vm6, %v1517_v58  ;;  %2623 = vmatprep.subr.bf16.mxu0 %v2764_v45 }
 0xaf7   : > { %v1521_v59 = vpop.permute.xlu1 %1520  ;;  %2624 = vmatpush3.bf16.msra.mxu0 %v2764_v45  ;;  %v2768_v45 = vld [vmem:[%s3728_s12 + $0x20] sm:$0xff]  }
 0xaf8   : > { %1530 = vst.msk [vmem:[#allocation2 + $0xc] sm:$0xf] %vm1526_vm6, %v1521_v59 }
 0xba3   : > { %v1722_v60 = vpop.f32.mrf.mxu1 }
 0xba4   : > { %v2449_v61 = vpack.c.bf16 %v1722_v60, %v1722_v60 }
 0xba5   : > { %v2605_v62 = vpop.f32.mrf.mxu1 }
 0xba6   : > { %1788 = vrot.lane.b32.xlu0 %v2449_v61, %s3095_s21 }
 0xba7   : > { %v1725_v63 = vpop.f32.mrf.mxu1 }
 0xba8   : > { %v2450_v1 = vpack.c.bf16 %v1725_v63, %v1725_v63 }
 0xba9   : > { %v2606_v3 = vpop.f32.mrf.mxu1 }
 0xbaa   : > { %1790 = vrot.lane.b32.xlu1 %v2450_v1, %s3095_s21 }
 0xbb2   : > { %v1769_v6 = vpop.f32.mrf.mxu0 }
 0xbb3   : > { %v2451_v7 = vpack.c.bf16 %v1769_v6, %v1769_v6 }
 0xbb4   : > { %v2611_v8 = vpop.f32.mrf.mxu0 }
 0xbb5   : > { %1792 = vrot.lane.b32.xlu0 %v2451_v7, %s3095_s21 }
 0xbb6   : > { %v1772_v9 = vpop.f32.mrf.mxu0 }
 0xbb7   : > { %v2452_v10 = vpack.c.bf16 %v1772_v9, %v1772_v9 }
 0xbb8   : > { %v2612_v11 = vpop.f32.mrf.mxu0 }
 0xbb9   : > { %1794 = vrot.lane.b32.xlu1 %v2452_v10, %s3095_s21  ;;  %s2232_s21 = sshll.u32 %s540_s19, 4  ;;  %s3665_s21 = int_to_ptr.vmem [resolvable:$true] %s2232_s21 }
 0xbba   : > { %s2997_s14 = scalar_lea.vmem %s3665_s21, 512  ;;  %p3004_p3 = scmp.lt.s32.totalorder %s3665_s21, %s3002_s10 }
 0xbbb   : > { %p2998_p11 = scmp.ne.s32.totalorder %s3665_s21, %s2997_s14  ;;  %p3005_p0 = scmp.lt.s32.totalorder %s3003_s25, %s2997_s14 }
 0xbbd   : > { %p2999_p2 = pnand %p2998_p11, %p3764_p12  ;;  %p3006_p5 = por %p3005_p0, %p3004_p3 }
 0xbbf   : > { %p3000_p6 = pneg %p2999_p2 }
 0xbc1   : > { %p3007_p1 = pnand %p3006_p5, %p3000_p6 }
 0xc18   : > { %v1789_v0 = vpop.permute.xlu0 %1788 }
 0xc19   : > { %1801 = vst.msk [vmem:[#allocation2] sm:$0xf] %vm1800_vm7, %v1789_v0 }
 0xc1c   : > { %v1791_v12 = vpop.permute.xlu1 %1790 }
 0xc1d   : > { %1802 = vst.msk [vmem:[#allocation2 + $0x4] sm:$0xf] %vm1800_vm7, %v1791_v12 }
 0xc24   : > { %v2759_v13 = vld [vmem:[#allocation2] sm:$0xff]  }
 0xc25   : > { %2617 = vmatprep.mubr.msk.bf16.mxu1 %vm550_vm0, %v2759_v13 }
 0xc27   : > { %v1793_v14 = vpop.permute.xlu0 %1792 }
 0xc28   : > { %1803 = vst.msk [vmem:[#allocation2 + $0x8] sm:$0xf] %vm1800_vm7, %v1793_v14 }
 0xc2b   : > { %v1795_v15 = vpop.permute.xlu1 %1794 }
 0xc2c   : > { %1804 = vst.msk [vmem:[#allocation2 + $0xc] sm:$0xf] %vm1800_vm7, %v1795_v15 }
 0xc33   : > { %v2762_v16 = vld [vmem:[#allocation2 + $0x8] sm:$0xff]  }
 0xc34   : > { %2618 = vmatmul.mubr.msk.bf16.vlgmr.msra.gmra.mxu1 %vm550_vm0, %v2762_v16 }
 0xcf4   : > { %v2619_v18 = vpop.f32.mrf.mxu1 }
 0xcf5   : > { %v1891_v20 = vadd.f32 %v2619_v18, %v2406_v17  ;;  %v2413_v18 = vld [vmem:[%s3724_s8] ss:$0 sm:$0xff] }
 0xcf6   : > { %v1882_v22 = vpop.f32.mrf.mxu1 }
 0xcf7   : > { %v3590_v24 = vadd.f32 %v2861_v23, %v1891_v20  ;;  %v1883_v25 = vadd.f32 %v2406_v17, %v1882_v22 }
 0xcf8   : > { %v2620_v26 = vpop.f32.mrf.mxu1 }
 0xcf9   : > { %v3593_v28 = vadd.f32 %v2862_v27, %v1883_v25  ;;  %v1894_v29 = vadd.f32 %v2620_v26, %v2406_v17  ;;  %v1909_v30 = vsel %vm550_vm0, %v3590_v24, 0.0  ;;  %v1921_v52 = vmul.f32 %v3590_v24, %v3590_v24 }
 0xcfa   : > { %1910 = vadd.xlane.f32.xlu0 %v1909_v30  ;;  %v1885_v31 = vpop.f32.mrf.mxu1  ;;  %v2414_v30 = vld [vmem:[#allocation8] ss:$0 sm:$0xff] }
 0xcfb   : > { %v1886_v32 = vadd.f32 %v2406_v17, %v1885_v31  ;;  %v3598_v34 = vadd.f32 %v2863_v33, %v1894_v29  ;;  %v1903_v36 = vsel %vm550_vm0, %v3593_v28, 0.0  ;;  %v1919_v37 = vmul.f32 %v3593_v28, %v3593_v28 }
 0xcfc   : > { %v1929_v43 = vsel %vm550_vm0, %v1921_v52, 0.0 }
 0xcfd   : > { %v3601_v21 = vadd.f32 %v2864_v19, %v1886_v32  ;;  %v1912_v35 = vsel %vm550_vm0, %v3598_v34, 0.0  ;;  %v1922_v40 = vmul.f32 %v3598_v34, %v3598_v34  ;;  %v1923_v41 = vsel %vm550_vm0, %v1919_v37, 0.0 }
 0xcfe   : > { %1904 = vadd.xlane.f32.xlu0 %v1903_v36 }
 0xcff   : > { %v1906_v49 = vsel %vm550_vm0, %v3601_v21, 0.0  ;;  %v1920_v38 = vmul.f32 %v3601_v21, %v3601_v21  ;;  %v1932_v42 = vsel %vm550_vm0, %v1922_v40, 0.0 }
 0xd00   : > { %1907 = vadd.xlane.f32.xlu1 %v1906_v49 }
 0xd01   : > { %v1926_v39 = vsel %vm550_vm0, %v1920_v38, 0.0 }
 0xd02   : > { %1913 = vadd.xlane.f32.xlu0 %v1912_v35 }
 0xd04   : > { %1927 = vadd.xlane.f32.xlu1 %v1926_v39 }
 0xd06   : > { %1924 = vadd.xlane.f32.xlu0 %v1923_v41 }
 0xd08   : > { %1933 = vadd.xlane.f32.xlu1 %v1932_v42  ;;  %v2765_v42 = vld [vmem:[%s3728_s12 + $0x38] sm:$0xff]  }
 0xd09   : > { %2629 = vmatprep.subr.bf16.mxu1 %v2765_v42 }
 0xd0a   : > { %1930 = vadd.xlane.f32.xlu0 %v1929_v43  ;;  %2630 = vmatpush3.bf16.msra.mxu1 %v2765_v42  ;;  %v2766_v43 = vld [vmem:[%s3728_s12 + $0x30] sm:$0xff]  }
 0xd0b   : > { %2631 = vmatprep.subr.bf16.mxu1 %v2766_v43 }
 0xd0e   : > { %2632 = vmatpush3.bf16.msra.mxu1 %v2766_v43 }
 0xd0f   : > { %2633 = vmatprep.subr.bf16.mxu1 %v2767_v44 }
 0xd12   : > { %2634 = vmatpush3.bf16.msra.mxu1 %v2767_v44 }
 0xd13   : > { %2635 = vmatprep.subr.bf16.mxu1 %v2768_v45 }
 0xd16   : > { %2636 = vmatpush3.bf16.msra.mxu1 %v2768_v45 }
 0xd83   : > { %v1911_v46 = vpop.xlane.xlu0 %1910 }
 0xd84   : > { %v1917_v57 = vmul.f32 0.03125, %v1911_v46  ;;  %v2769_v46 = vld [vmem:[%s3728_s12 + $0x18] sm:$0xff]  }
 0xd85   : > { %2637 = vmatprep.subr.bf16.mxu1 %v2769_v46 }
 0xd86   : > { %v1941_v5 = vmul.f32 %v1917_v57, %v1917_v57  ;;  %v1953_v31 = vsub.f32 %v3590_v24, %v1917_v57  ;;  %2638 = vmatpush3.bf16.msra.mxu1 %v2769_v46 }
 0xd87   : > { %v1905_v47 = vpop.xlane.xlu0 %1904 }
 0xd88   : > { %v1915_v53 = vmul.f32 0.03125, %v1905_v47  ;;  %v2770_v47 = vld [vmem:[%s3728_s12 + $0x10] sm:$0xff]  }
 0xd89   : > { %v1908_v48 = vpop.xlane.xlu1 %1907  ;;  %2639 = vmatprep.subr.bf16.mxu1 %v2770_v47 }
 0xd8a   : > { %v1916_v50 = vmul.f32 0.03125, %v1908_v48  ;;  %v1939_v59 = vmul.f32 %v1915_v53, %v1915_v53  ;;  %v1951_v20 = vsub.f32 %v3593_v28, %v1915_v53  ;;  %2640 = vmatpush3.bf16.msra.mxu1 %v2770_v47  ;;  %v2771_v48 = vld [vmem:[%s3728_s12 + $0x8] sm:$0xff]  }
 0xd8b   : > { %v1914_v51 = vpop.xlane.xlu0 %1913  ;;  %2641 = vmatprep.subr.bf16.mxu1 %v2771_v48 }
 0xd8c   : > { %v1940_v55 = vmul.f32 %v1916_v50, %v1916_v50  ;;  %v1918_v56 = vmul.f32 0.03125, %v1914_v51  ;;  %v1952_v16 = vsub.f32 %v3601_v21, %v1916_v50  ;;  %v2772_v50 = vld [vmem:[%s3728_s12] sm:$0xff]   ;;  %v2415_v51 = vld [vmem:[#allocation11] ss:$0 sm:$0xff] }
 0xd8d   : > { %v1928_v54 = vpop.xlane.xlu1 %1927 }
 0xd8e   : > { %v1936_v2 = vmul.f32 0.03125, %v1928_v54  ;;  %v1942_v63 = vmul.f32 %v1918_v56, %v1918_v56  ;;  %v1954_v25 = vsub.f32 %v3598_v34, %v1918_v56  ;;  %2642 = vmatpush3.bf16.msra.mxu1 %v2771_v48 }
 0xd8f   : > { %v1925_v58 = vpop.xlane.xlu0 %1924  ;;  %2643 = vmatprep.subr.bf16.mxu1 %v2772_v50 }
 0xd90   : > { %v1944_v60 = vsub.f32 %v1936_v2, %v1940_v55  ;;  %v1935_v61 = vmul.f32 0.03125, %v1925_v58 }
 0xd91   : > { %v1934_v62 = vpop.xlane.xlu1 %1933 }
 0xd92   : > { %v1948_v1 = vmax.f32 %v1944_v60, 0.0  ;;  %v1943_v3 = vsub.f32 %v1935_v61, %v1939_v59  ;;  %v1938_v4 = vmul.f32 0.03125, %v1934_v62  ;;  %2644 = vmatpush3.bf16.msra.mxu1 %v2772_v50 }
 0xd93   : > { %v1931_v6 = vpop.xlane.xlu0 %1930 }
 0xd94   : > { %v1956_v7 = vadd.f32 1e-05, %v1948_v1  ;;  %v1947_v8 = vmax.f32 %v1943_v3, 0.0  ;;  %v1946_v9 = vsub.f32 %v1938_v4, %v1942_v63  ;;  %v1937_v10 = vmul.f32 0.03125, %v1931_v6 }
 0xd96   : > { %2845 = vrsqrt.f32 %v1956_v7  ;;  %v1955_v11 = vadd.f32 1e-05, %v1947_v8  ;;  %v1950_v0 = vmax.f32 %v1946_v9, 0.0  ;;  %v1945_v12 = vsub.f32 %v1937_v10, %v1941_v5 }
 0xd98   : > { %2847 = vrsqrt.f32 %v1955_v11  ;;  %v1958_v13 = vadd.f32 1e-05, %v1950_v0  ;;  %v1949_v14 = vmax.f32 %v1945_v12, 0.0 }
 0xd9a   : > { %2849 = vrsqrt.f32 %v1958_v13  ;;  %v1957_v15 = vadd.f32 1e-05, %v1949_v14 }
 0xd9c   : > { %2851 = vrsqrt.f32 %v1957_v15 }
 0xda3   : > { %v2846_v17 = vpop.eup %2845 }
 0xda4   : > { %v1964_v22 = vmul.f32 %v2846_v17, %v1952_v16 }
 0xda5   : > { %v2848_v23 = vpop.eup %2847 }
 0xda6   : > { %v1963_v26 = vmul.f32 %v2848_v23, %v1951_v20  ;;  %v1974_v27 = vmul.f32 %v2413_v18, %v1964_v22  ;;  %v2420_v20 = vld [vmem:[%s3729_s13] ss:$0 sm:$0xff] }
 0xda7   : > { %v2850_v29 = vpop.eup %2849 }
 0xda8   : > { %v1966_v32 = vmul.f32 %v2850_v29, %v1954_v25  ;;  %v1973_v33 = vmul.f32 %v2413_v18, %v1963_v26  ;;  %v1984_v38 = vadd.f32 %v2414_v30, %v1974_v27 }
 0xda9   : > { %v2852_v19 = vpop.eup %2851 }
 0xdaa   : > { %v1965_v36 = vmul.f32 %v2852_v19, %v1953_v31  ;;  %v1983_v49 = vadd.f32 %v2414_v30, %v1973_v33  ;;  %v1976_v35 = vmul.f32 %v2413_v18, %v1966_v32 }
 0xdac   : > { %v1987_v37 = vpack.c.bf16 %v1984_v38, %v1983_v49  ;;  %v1975_v39 = vmul.f32 %v2413_v18, %v1965_v36  ;;  %v1986_v41 = vadd.f32 %v2414_v30, %v1976_v35 }
 0xdae   : > { %2625 = vmatprep.mubr.msk.bf16.mxu0 %vm550_vm0, %v1987_v37  ;;  %v1985_v40 = vadd.f32 %v2414_v30, %v1975_v39 }
 0xdb0   : > { %v1988_v52 = vpack.c.bf16 %v1986_v41, %v1985_v40 }
 0xdb2   : > { %2626 = vmatmul.mubr.msk.bf16.vlgmr.msra.gmra.mxu0 %vm550_vm0, %v1988_v52 }
 0xe72   : > { %v2627_v53 = vpop.f32.mrf.mxu0 }
 0xe73   : > { %v2061_v54 = vadd.f32 %v2627_v53, %v2415_v51 }
 0xe74   : > { %v2052_v55 = vpop.f32.mrf.mxu0 }
 0xe75   : > { %v2053_v56 = vadd.f32 %v2415_v51, %v2052_v55  ;;  %v2073_v2 = vmul.f32 0.70710677, %v2061_v54  ;;  %v2069_v12 = vmul.f32 0.5, %v2061_v54 }
 0xe76   : > { %v2628_v57 = vpop.f32.mrf.mxu0 }
 0xe77   : > { %v2071_v58 = vmul.f32 0.70710677, %v2053_v56  ;;  %v2064_v59 = vadd.f32 %v2628_v57, %v2415_v51  ;;  %v2067_v10 = vmul.f32 0.5, %v2053_v56 }
 0xe78   : > { %v2055_v60 = vpop.f32.mrf.mxu0 }
 0xe79   : > { %2853 = verf.f32 %v2071_v58  ;;  %v2074_v61 = vmul.f32 0.70710677, %v2064_v59  ;;  %v2056_v62 = vadd.f32 %v2415_v51, %v2055_v60  ;;  %v2070_v9 = vmul.f32 0.5, %v2064_v59 }
 0xe7a   : > { %2855 = verf.f32 %v2073_v2 }
 0xe7b   : > { %2857 = verf.f32 %v2074_v61  ;;  %v2072_v63 = vmul.f32 0.70710677, %v2056_v62  ;;  %v2068_v11 = vmul.f32 0.5, %v2056_v62 }
 0xe7d   : > { %2859 = verf.f32 %v2072_v63 }
 0xe86   : > { %v2854_v1 = vpop.eup %2853 }
 0xe87   : > { %v2856_v3 = vpop.eup %2855  ;;  %v2079_v5 = vadd.f32 1.0, %v2854_v1 }
 0xe88   : > { %v2858_v4 = vpop.eup %2857  ;;  %v2081_v8 = vadd.f32 1.0, %v2856_v3 }
 0xe89   : > { %v2082_v6 = vadd.f32 1.0, %v2858_v4  ;;  %v2083_v14 = vmul.f32 %v2079_v5, %v2067_v10 }
 0xe8a   : > { %v2860_v7 = vpop.eup %2859  ;;  %v2085_v16 = vmul.f32 %v2081_v8, %v2069_v12 }
 0xe8b   : > { %v2080_v0 = vadd.f32 1.0, %v2860_v7  ;;  %v2086_v13 = vmul.f32 %v2082_v6, %v2070_v9 }
 0xe8d   : > { %v2084_v15 = vmul.f32 %v2080_v0, %v2068_v11  ;;  %v2088_v18 = vpack.c.bf16 %v2086_v13, %v2085_v16 }
 0xe8f   : > { %v2087_v17 = vpack.c.bf16 %v2084_v15, %v2083_v14 }
 0xe91   : > { %2645 = vmatprep.mubr.bf16.mxu1 %v2087_v17 }
 0xe92   : > { %2646 = vmatmul.mubr.bf16.vlgmr.msra.gmra.mxu1 %v2088_v18 }
 0xf52   : > { %v2647_v22 = vpop.f32.mrf.mxu1 }
 0xf53   : > { %v2203_v23 = vadd.f32 %v2647_v22, %v2420_v20 }
 0xf54   : > { %v2194_v25 = vpop.f32.mrf.mxu1 }
 0xf55   : > { %v2211_v26 = vadd.f32 %v2203_v23, %v3590_v24  ;;  %v2195_v27 = vadd.f32 %v2420_v20, %v2194_v25 }
 0xf56   : > { %v2648_v29 = vpop.f32.mrf.mxu1 }
 0xf57   : > { %2215 = vst.msk [vmem:[%s540_s19 + $0x10] sm:$0xff] %vm550_vm0, %v2211_v26  ;;  %v2209_v30 = vadd.f32 %v2195_v27, %v3593_v28  ;;  %v2206_v31 = vadd.f32 %v2648_v29, %v2420_v20 }
 0xf58   : > { %v2197_v32 = vpop.f32.mrf.mxu1 }
 0xf59   : > { %2213 = vst.msk [vmem:[%s540_s19] sm:$0xff] %vm550_vm0, %v2209_v30  ;;  %v2212_v33 = vadd.f32 %v2206_v31, %v3598_v34  ;;  %v2198_v19 = vadd.f32 %v2420_v20, %v2197_v32 }
 0xf5b   : > { %2216 = vst.msk [vmem:[%s540_s19 + $0x18] sm:$0xff] %vm550_vm0, %v2212_v33  ;;  %v2210_v24 = vadd.f32 %v2198_v19, %v3601_v21 }
 0xf5d   : > { %2214 = vst.msk [vmem:[%s540_s19 + $0x8] sm:$0xff] %vm550_vm0, %v2210_v24 }
 0xf5e   : > { %3010 = shalt.err (!%p3007_p1)
}
 0xf5f   : > { %s3011_s22 = scalar_lea.hbm %s3672_s24, 512  ;;  %s3015_s20 = scalar_lea.hbm %s3763_s18, 2048 }
 0xf60   : > { %p3012_p7 = scmp.ne.s32.totalorder %s3672_s24, %s3011_s22  ;;  %p3016_p13 = scmp.lt.s32.totalorder %s3672_s24, %s3763_s18 }
 0xf61   : > { %p3017_p10 = scmp.lt.s32.totalorder %s3015_s20, %s3011_s22 }
 0xf62   : > { %p3013_p4 = pnand %p3012_p7, %p3764_p12 }
 0xf63   : > { %p3018_p9 = por %p3017_p10, %p3016_p13 }
 0xf64   : > { %p3014_p8 = pneg %p3013_p4 }
 0xf66   : > { %p3019_p11 = pnand %p3018_p9, %p3014_p8 }
 0xf68   : > { %3022 = shalt.err (!%p3019_p11)
}
 0xf69   : > { %s3097_s14 = smov 128  }
 0xf6a   : > { %2667 = dma.vmem_to_hbm [thread:$0]  (%p3764_p12), %s3665_s21, 512, %s3672_s24, %s2218_s17, %s3097_s14, %s3097_s14, %s3093_s9  }
 0xf6b PF: > { %s3765_s26 = sld [smem:[#allocation17_spill]]  ;;  %p2699_p2 = scmp.ge.s32.totalorder %s3069_s16, 2 }
 0xf6c   : > { %s3766_s10 = sld [smem:[#allocation18_spill]] }
 0xf71   : > { %s2247_s25 = sand.u32 1, %s3765_s26  }
 0xf72   : > { %p3767_p6 = scmp.ne.s32.totalorder %s3766_s10, 0  ;;  %s2248_s22 = scalar_lea.sflag [#allocation5], %s2247_s25 }
 0xf74   : > { %p2687_p3 = pnand %p2699_p2, %p3767_p6 }
 0xf76   : > { %p2688_p0 = pneg %p2687_p3 }
 0xf78   : > { %3052 = dma.done.wait (%p2688_p0), %s2248_s22, 512  }
 0xf79   : > { %3054 = vsyncadd (%p2688_p0), %s2248_s22, 4294966784  ;;  %s3768_s6 = sld [smem:[#allocation19_spill]]  ;;  %p29_p5 = scmp.ge.s32.totalorder %s3260_s28, 6  }
 0xf7a   : > { %s3769_s29 = smov %s3061_s30  ;;  %s3770_s30 = smov %s3065_s15 }
 0xf7b   : > { %s3772_s16 = smov %s3260_s28  ;;  %31 = sbr.rel (!%p29_p5) target bundleno = 13 (0xd), region = 140 }
 0xf7f   : > { %s3771_s15 = smov %s3768_s6 }
 0xf80   :  { %2253 = vsyncpa [#allocation4], 1 }
 0xf81   :  { %2255 = vsyncpa [#allocation4 + $0x1], 1 }
 0xf82   :  { %2256 = vsyncpa [#allocation7], 1 }
 0xf83   :  { %2257 = vsyncpa [#allocation10], 1 }
 0xf84   :  { %2258 = vsyncpa [#allocation5], 1 }
 0xf85   :  { %2260 = vsyncpa [#allocation5 + $0x1], 1 }

</bundles_post_ra>
